<compile_context>
chip_gen: v7x
topology: tpu7x:2x2x1
jax: 0.10.0
libtpu: 0.0.40
codegen_flags: <defaults>
</compile_context>

<pallas_src>
import jax
import jax.numpy as jnp
from jax import lax
from jax.experimental import pallas as pl
from jax.experimental.pallas import tpu as pltpu


# -----------------------------------------------------------------------------
# Single fused kernel: conv1 -> conv2 -> global avg pool -> MLP head (per image)
# -----------------------------------------------------------------------------
def fused_forward_kernel(x_ref, w1_ref, b1_ref, w2_ref, b2_ref,
                         wf1_ref, bf1_ref, wf2_ref, bf2_ref, wf3_ref, bf3_ref,
                         out_ref):
    _, H, W, C = x_ref.shape
    WPAD = ((W + 2 + 7) // 8) * 8       # tile-friendly padded width (8 -> 16)
    M = H * WPAD                        # wide-flat rows (= 128 for 8x8)

    # "wide-flat" layout: row p = i*WPAD + j holds pixel (i, j); columns >= W are zero
    # and act as the W-direction padding for the 3x3 conv.
    x = x_ref[...].reshape(H, W, C)
    xw = jnp.concatenate(
        [x, jnp.zeros((H, WPAD - W, C), jnp.float32)], axis=1).reshape(M, C)

    # Static border masks (full lane width, built from 2-D iota; no int division).
    ii = lax.broadcasted_iota(jnp.int32, (H, WPAD, C), 0)
    jj = lax.broadcasted_iota(jnp.int32, (H, WPAD, C), 1)
    col_valid = (jj < W).reshape(M, C)          # real (non-padding) columns
    top_ok = (ii >= 1).reshape(M, C)            # taps with dh == 0 need row i-1
    bot_ok = (ii <= H - 2).reshape(M, C)        # taps with dh == 2 need row i+1

    def conv3x3_bn_relu(xflat, w_ref, b_ref):
        # xflat: (M, C) f32, zero in padding columns.
        # w_ref: (9*C, C) bf16 im2col weights (BN scale folded).
        # b_ref: (1, C) f32 effective bias (conv bias + BN shift folded).
        taps = []
        for dh in range(3):
            for dw in range(3):
                s = (dh - 1) * WPAD + (dw - 1)          # source offset in flat rows
                t = xflat if s == 0 else pltpu.roll(xflat, shift=(-s) % M, axis=0)
                if dh == 0:                              # top border -> zero padding
                    t = jnp.where(top_ok, t, 0.0)
                elif dh == 2:                            # bottom border -> zero padding
                    t = jnp.where(bot_ok, t, 0.0)
                taps.append(t)
        patches = jnp.concatenate(taps, axis=1)          # (M, 9*C) im2col
        acc = jnp.dot(patches.astype(w_ref.dtype), w_ref[...],
                      preferred_element_type=jnp.float32)    # single long-K MXU matmul
        y = jnp.maximum(acc + b_ref[...], 0.0)           # folded BN + ReLU (f32 epilogue)
        return jnp.where(col_valid, y, 0.0)              # keep padding columns exactly 0

    h = conv3x3_bn_relu(xw, w1_ref, b1_ref)
    h = conv3x3_bn_relu(h, w2_ref, b2_ref)

    # AdaptiveAvgPool2d((1,1)) + Flatten (padding columns are already zero).
    pooled = jnp.sum(h, axis=0, keepdims=True) * (1.0 / (H * W))   # (1, C)

    # Classifier head (BN1d folded into weights/biases; Dropout = identity in eval).
    z = jnp.maximum(
        jnp.dot(pooled, wf1_ref[...], preferred_element_type=jnp.float32)
        + bf1_ref[...], 0.0)
    z = jnp.maximum(
        jnp.dot(z, wf2_ref[...], preferred_element_type=jnp.float32)
        + bf2_ref[...], 0.0)
    out_ref[0] = (jnp.dot(z, wf3_ref[...], preferred_element_type=jnp.float32)
                  + bf3_ref[...])


def fused_forward(x_nhwc, prep):
    B, H, W, C = x_nhwc.shape
    K9 = prep["w1"].shape[0]
    H1 = prep["wf1"].shape[1]
    H2 = prep["wf2"].shape[1]
    NC = prep["wf3"].shape[1]

    def const(shape):
        return pl.BlockSpec(shape, lambda b: (0,) * len(shape))

    out = pl.pallas_call(
        fused_forward_kernel,
        out_shape=jax.ShapeDtypeStruct((B, 1, NC), jnp.float32),
        grid_spec=pltpu.PrefetchScalarGridSpec(
            num_scalar_prefetch=0,
            grid=(B,),
            in_specs=[
                pl.BlockSpec((1, H, W, C), lambda b: (b, 0, 0, 0)),
                const((K9, C)), const((1, C)),       # conv1 (im2col, BN folded)
                const((K9, C)), const((1, C)),       # conv2
                const((C, H1)), const((1, H1)),      # fc1 (BN folded)
                const((H1, H2)), const((1, H2)),     # fc2 (BN folded)
                const((H2, NC)), const((1, NC)),     # fc3
            ],
            out_specs=pl.BlockSpec((1, 1, NC), lambda b: (b, 0, 0)),
        ),
        compiler_params=pltpu.CompilerParams(
            dimension_semantics=("parallel",)),      # both v7x TensorCores used
    )(x_nhwc, prep["w1"], prep["b1"], prep["w2"], prep["b2"],
      prep["wf1"], prep["bf1"], prep["wf2"], prep["bf2"],
      prep["wf3"], prep["bf3"])
    return out.reshape(B, NC)


# -----------------------------------------------------------------------------
# Parameter preparation (done ONCE, outside the jitted forward)
# -----------------------------------------------------------------------------
def bn_fold(gamma, beta, mean, var, eps=1e-5):
    scale = gamma / jnp.sqrt(var + eps)
    shift = beta - mean * scale
    return scale, shift


def prepare_params(p):
    """Fold eval-mode BatchNorm (+ conv bias) into effective weights/biases,
    reshape conv weights to im2col (9*Cin, Cout) layout, cast conv matmul
    weights to bf16. Runs once at load time (not inside the jitted forward)."""
    prep = {}
    for idx, (wk, bk, bnk) in enumerate(
            (("w_conv1", "b_conv1", "bn1"), ("w_conv2", "b_conv2", "bn2")), 1):
        s, sh = bn_fold(*p[bnk])
        w = p[wk] * s[None, None, None, :]                       # fold BN scale (HWIO)
        cout = w.shape[-1]
        prep[f"w{idx}"] = w.reshape(-1, cout).astype(jnp.bfloat16)   # (9*Cin, Cout)
        prep[f"b{idx}"] = (p[bk] * s + sh)[None, :]               # conv bias + BN shift
    s, sh = bn_fold(*p["bn_fc1"])
    prep["wf1"] = p["w_fc1"] * s[None, :]
    prep["bf1"] = (p["b_fc1"] * s + sh)[None, :]
    s, sh = bn_fold(*p["bn_fc2"])
    prep["wf2"] = p["w_fc2"] * s[None, :]
    prep["bf2"] = (p["b_fc2"] * s + sh)[None, :]
    prep["wf3"] = p["w_fc3"]
    prep["bf3"] = p["b_fc3"][None, :]
    return prep


def make_params(key, latent_dim=128, num_classes=3):
    ks = jax.random.split(key, 16)
    p = {}
    # Conv block 1
    p["w_conv1"] = 0.05 * jax.random.normal(ks[0], (3, 3, latent_dim, latent_dim), jnp.float32)  # HWIO
    p["b_conv1"] = 0.05 * jax.random.normal(ks[1], (latent_dim,), jnp.float32)
    p["bn1"] = (1.0 + 0.1 * jax.random.normal(ks[2], (latent_dim,), jnp.float32),    # gamma
                0.1 * jax.random.normal(ks[3], (latent_dim,), jnp.float32),          # beta
                0.1 * jax.random.normal(ks[4], (latent_dim,), jnp.float32),          # running_mean
                0.5 + jnp.abs(jax.random.normal(ks[5], (latent_dim,), jnp.float32)))  # running_var
    # Conv block 2
    p["w_conv2"] = 0.05 * jax.random.normal(ks[6], (3, 3, latent_dim, latent_dim), jnp.float32)
    p["b_conv2"] = 0.05 * jax.random.normal(ks[7], (latent_dim,), jnp.float32)
    p["bn2"] = (1.0 + 0.1 * jax.random.normal(ks[8], (latent_dim,), jnp.float32),
                0.1 * jax.random.normal(ks[9], (latent_dim,), jnp.float32),
                0.1 * jax.random.normal(ks[10], (latent_dim,), jnp.float32),
                0.5 + jnp.abs(jax.random.normal(ks[11], (latent_dim,), jnp.float32)))
    # Classifier: Linear(latent,256)+BN, Linear(256,64)+BN, Linear(64,num_classes)
    p["w_fc1"] = 0.05 * jax.random.normal(ks[12], (latent_dim, 256), jnp.float32)
    p["b_fc1"] = jnp.zeros((256,), jnp.float32)
    p["bn_fc1"] = (jnp.ones((256,), jnp.float32), jnp.zeros((256,), jnp.float32),
                   jnp.zeros((256,), jnp.float32), jnp.ones((256,), jnp.float32))
    p["w_fc2"] = 0.05 * jax.random.normal(ks[13], (256, 64), jnp.float32)
    p["b_fc2"] = jnp.zeros((64,), jnp.float32)
    p["bn_fc2"] = (jnp.ones((64,), jnp.float32), jnp.zeros((64,), jnp.float32),
                   jnp.zeros((64,), jnp.float32), jnp.ones((64,), jnp.float32))
    p["w_fc3"] = 0.05 * jax.random.normal(ks[14], (64, num_classes), jnp.float32)
    p["b_fc3"] = 0.05 * jax.random.normal(ks[15], (num_classes,), jnp.float32)
    return p


# -----------------------------------------------------------------------------
# Forward pass (jitted): transpose + single fused Pallas call
# -----------------------------------------------------------------------------
@jax.jit
def forward(x_nchw, prep):
    # TODO(synk): self.encoder is an externally supplied module; modeled as identity.
    feats = jnp.transpose(x_nchw, (0, 2, 3, 1))   # NCHW -> NHWC (channels -> lanes)
    return fused_forward(feats, prep)


# -----------------------------------------------------------------------------
# Pure-JAX reference (same eval-mode semantics) for a correctness check
# -----------------------------------------------------------------------------
def forward_ref(x_nchw, p):
    x = jnp.transpose(x_nchw, (0, 2, 3, 1))
    for wk, bk, bnk in (("w_conv1", "b_conv1", "bn1"), ("w_conv2", "b_conv2", "bn2")):
        y = lax.conv_general_dilated(
            x, p[wk], window_strides=(1, 1), padding="SAME",
            dimension_numbers=("NHWC", "HWIO", "NHWC")) + p[bk]
        s, sh = bn_fold(*p[bnk])
        x = jnp.maximum(y * s + sh, 0.0)
    pooled = jnp.mean(x, axis=(1, 2))
    s, sh = bn_fold(*p["bn_fc1"])
    h = jnp.maximum((pooled @ p["w_fc1"] + p["b_fc1"]) * s + sh, 0.0)
    s, sh = bn_fold(*p["bn_fc2"])
    h = jnp.maximum((h @ p["w_fc2"] + p["b_fc2"]) * s + sh, 0.0)
    return h @ p["w_fc3"] + p["b_fc3"]


if __name__ == "__main__":
    key = jax.random.PRNGKey(0)
    kx, kp = jax.random.split(key)

    B, LATENT, H, W = 2, 128, 8, 8            # encoder output / adapt_layers input
    NUM_CLASSES = 3
    x = jax.random.normal(kx, (B, LATENT, H, W), jnp.float32)   # NCHW (PyTorch convention)
    params = make_params(kp, latent_dim=LATENT, num_classes=NUM_CLASSES)
    prep = prepare_params(params)             # BN folding done once, outside jitted forward

    out = jax.block_until_ready(forward(x, prep))
    assert out.shape == (B, NUM_CLASSES), out.shape

    ref = jax.block_until_ready(forward_ref(x, params))
    # Conv matmul operands are bf16 (f32 accumulation); tolerance sized accordingly.
    assert jnp.allclose(out, ref, atol=3e-2, rtol=3e-2), (out, ref)

    print("KERNEL_OK")
</pallas_src>

<mosaic_0001>
module attributes {stable_mosaic.version = 11 : i64} {
  func.func @fused_forward_kernel(%arg0: i32, %arg1: memref<1x8x8x128xf32, #tpu.memory_space<vmem>>, %arg2: memref<1152x128xbf16, #tpu.memory_space<vmem>>, %arg3: memref<1x128xf32, #tpu.memory_space<vmem>>, %arg4: memref<1152x128xbf16, #tpu.memory_space<vmem>>, %arg5: memref<1x128xf32, #tpu.memory_space<vmem>>, %arg6: memref<128x256xf32, #tpu.memory_space<vmem>>, %arg7: memref<1x256xf32, #tpu.memory_space<vmem>>, %arg8: memref<256x64xf32, #tpu.memory_space<vmem>>, %arg9: memref<1x64xf32, #tpu.memory_space<vmem>>, %arg10: memref<64x3xf32, #tpu.memory_space<vmem>>, %arg11: memref<1x3xf32, #tpu.memory_space<vmem>>, %arg12: memref<1x1x3xf32, #tpu.memory_space<vmem>>) attributes {dimension_semantics = [#tpu.dimension_semantics<parallel>], iteration_bounds = array<i64: 2>, scalar_prefetch = 0 : i64, scratch_operands = 0 : i64, tpu.core_type = #tpu.core_type<tc>, window_params = [{transform_indices = @transform_0, window_bounds = array<i64: 1, 8, 8, 128>}, {pipeline_mode = #tpu.pipeline_mode<synchronous>, transform_indices = @transform_1, window_bounds = array<i64: 1152, 128>}, {pipeline_mode = #tpu.pipeline_mode<synchronous>, transform_indices = @transform_2, window_bounds = array<i64: 1, 128>}, {pipeline_mode = #tpu.pipeline_mode<synchronous>, transform_indices = @transform_3, window_bounds = array<i64: 1152, 128>}, {pipeline_mode = #tpu.pipeline_mode<synchronous>, transform_indices = @transform_4, window_bounds = array<i64: 1, 128>}, {pipeline_mode = #tpu.pipeline_mode<synchronous>, transform_indices = @transform_5, window_bounds = array<i64: 128, 256>}, {pipeline_mode = #tpu.pipeline_mode<synchronous>, transform_indices = @transform_6, window_bounds = array<i64: 1, 256>}, {pipeline_mode = #tpu.pipeline_mode<synchronous>, transform_indices = @transform_7, window_bounds = array<i64: 256, 64>}, {pipeline_mode = #tpu.pipeline_mode<synchronous>, transform_indices = @transform_8, window_bounds = array<i64: 1, 64>}, {pipeline_mode = #tpu.pipeline_mode<synchronous>, transform_indices = @transform_9, window_bounds = array<i64: 64, 3>}, {pipeline_mode = #tpu.pipeline_mode<synchronous>, transform_indices = @transform_10, window_bounds = array<i64: 1, 3>}, {transform_indices = @transform_11, window_bounds = array<i64: 1, 1, 3>}]} {
    %c0 = arith.constant 0 : index
    %c0_0 = arith.constant 0 : index
    %c0_1 = arith.constant 0 : index
    %c0_2 = arith.constant 0 : index
    %0 = vector.load %arg1[%c0, %c0_0, %c0_1, %c0_2] : memref<1x8x8x128xf32, #tpu.memory_space<vmem>>, vector<1x8x8x128xf32>
    %1 = vector.shape_cast %0 : vector<1x8x8x128xf32> to vector<8x8x128xf32>
    %cst = arith.constant 0.000000e+00 : f32
    %2 = vector.broadcast %cst : f32 to vector<8x8x128xf32>
    %3 = tpu.concatenate %1, %2 in 1 : vector<8x8x128xf32>, vector<8x8x128xf32> -> vector<8x16x128xf32>
    %4 = vector.shape_cast %3 : vector<8x16x128xf32> to vector<128x128xf32>
    %5 = tpu.iota {dimensions = array<i32: 0>} : vector<8x16x128xi32>
    %6 = tpu.iota {dimensions = array<i32: 1>} : vector<8x16x128xi32>
    %c8_i32 = arith.constant 8 : i32
    %7 = vector.broadcast %c8_i32 : i32 to vector<8x16x128xi32>
    %8 = arith.cmpi slt, %6, %7 : vector<8x16x128xi32>
    %9 = vector.shape_cast %8 : vector<8x16x128xi1> to vector<128x128xi1>
    %c1_i32 = arith.constant 1 : i32
    %10 = vector.broadcast %c1_i32 : i32 to vector<8x16x128xi32>
    %11 = arith.cmpi sge, %5, %10 : vector<8x16x128xi32>
    %12 = vector.shape_cast %11 : vector<8x16x128xi1> to vector<128x128xi1>
    %c6_i32 = arith.constant 6 : i32
    %13 = vector.broadcast %c6_i32 : i32 to vector<8x16x128xi32>
    %14 = arith.cmpi sle, %5, %13 : vector<8x16x128xi32>
    %15 = vector.shape_cast %14 : vector<8x16x128xi1> to vector<128x128xi1>
    %c17_i32 = arith.constant 17 : i32
    %16 = tpu.dynamic_rotate %4 by %c17_i32 dim 0 : vector<128x128xf32>, i32 -> vector<128x128xf32>
    %cst_3 = arith.constant 0.000000e+00 : f32
    %17 = vector.broadcast %cst_3 : f32 to vector<128x128xf32>
    %18 = arith.select %12, %16, %17 : vector<128x128xi1>, vector<128x128xf32>
    %c16_i32 = arith.constant 16 : i32
    %19 = tpu.dynamic_rotate %4 by %c16_i32 dim 0 : vector<128x128xf32>, i32 -> vector<128x128xf32>
    %cst_4 = arith.constant 0.000000e+00 : f32
    %20 = vector.broadcast %cst_4 : f32 to vector<128x128xf32>
    %21 = arith.select %12, %19, %20 : vector<128x128xi1>, vector<128x128xf32>
    %c15_i32 = arith.constant 15 : i32
    %22 = tpu.dynamic_rotate %4 by %c15_i32 dim 0 : vector<128x128xf32>, i32 -> vector<128x128xf32>
    %cst_5 = arith.constant 0.000000e+00 : f32
    %23 = vector.broadcast %cst_5 : f32 to vector<128x128xf32>
    %24 = arith.select %12, %22, %23 : vector<128x128xi1>, vector<128x128xf32>
    %c1_i32_6 = arith.constant 1 : i32
    %25 = tpu.dynamic_rotate %4 by %c1_i32_6 dim 0 : vector<128x128xf32>, i32 -> vector<128x128xf32>
    %c127_i32 = arith.constant 127 : i32
    %26 = tpu.dynamic_rotate %4 by %c127_i32 dim 0 : vector<128x128xf32>, i32 -> vector<128x128xf32>
    %c113_i32 = arith.constant 113 : i32
    %27 = tpu.dynamic_rotate %4 by %c113_i32 dim 0 : vector<128x128xf32>, i32 -> vector<128x128xf32>
    %cst_7 = arith.constant 0.000000e+00 : f32
    %28 = vector.broadcast %cst_7 : f32 to vector<128x128xf32>
    %29 = arith.select %15, %27, %28 : vector<128x128xi1>, vector<128x128xf32>
    %c112_i32 = arith.constant 112 : i32
    %30 = tpu.dynamic_rotate %4 by %c112_i32 dim 0 : vector<128x128xf32>, i32 -> vector<128x128xf32>
    %cst_8 = arith.constant 0.000000e+00 : f32
    %31 = vector.broadcast %cst_8 : f32 to vector<128x128xf32>
    %32 = arith.select %15, %30, %31 : vector<128x128xi1>, vector<128x128xf32>
    %c111_i32 = arith.constant 111 : i32
    %33 = tpu.dynamic_rotate %4 by %c111_i32 dim 0 : vector<128x128xf32>, i32 -> vector<128x128xf32>
    %cst_9 = arith.constant 0.000000e+00 : f32
    %34 = vector.broadcast %cst_9 : f32 to vector<128x128xf32>
    %35 = arith.select %15, %33, %34 : vector<128x128xi1>, vector<128x128xf32>
    %36 = tpu.concatenate %18, %21, %24, %25, %4, %26, %29, %32, %35 in 1 : vector<128x128xf32>, vector<128x128xf32>, vector<128x128xf32>, vector<128x128xf32>, vector<128x128xf32>, vector<128x128xf32>, vector<128x128xf32>, vector<128x128xf32>, vector<128x128xf32> -> vector<128x1152xf32>
    %37 = arith.truncf %36 : vector<128x1152xf32> to vector<128x1152xbf16>
    %c0_10 = arith.constant 0 : index
    %c0_11 = arith.constant 0 : index
    %38 = vector.load %arg2[%c0_10, %c0_11] : memref<1152x128xbf16, #tpu.memory_space<vmem>>, vector<1152x128xbf16>
    %cst_12 = arith.constant dense<0.000000e+00> : vector<128x128xf32>
    %39 = tpu.matmul %37, %38, %cst_12 {dimension_numbers = #tpu.dot_dimension_numbers<[1], [0], [0], [1], [0, 0, 1, 1], [], []>} : vector<128x1152xbf16>, vector<1152x128xbf16>, vector<128x128xf32> -> vector<128x128xf32>
    %c0_13 = arith.constant 0 : index
    %c0_14 = arith.constant 0 : index
    %40 = vector.load %arg3[%c0_13, %c0_14] : memref<1x128xf32, #tpu.memory_space<vmem>>, vector<1x128xf32>
    %41 = vector.broadcast %40 : vector<1x128xf32> to vector<128x128xf32>
    %42 = arith.addf %39, %41 : vector<128x128xf32>
    %cst_15 = arith.constant 0.000000e+00 : f32
    %43 = vector.broadcast %cst_15 : f32 to vector<128x128xf32>
    %44 = arith.maximumf %42, %43 : vector<128x128xf32>
    %cst_16 = arith.constant 0.000000e+00 : f32
    %45 = vector.broadcast %cst_16 : f32 to vector<128x128xf32>
    %46 = arith.select %9, %44, %45 : vector<128x128xi1>, vector<128x128xf32>
    %c17_i32_17 = arith.constant 17 : i32
    %47 = tpu.dynamic_rotate %46 by %c17_i32_17 dim 0 : vector<128x128xf32>, i32 -> vector<128x128xf32>
    %cst_18 = arith.constant 0.000000e+00 : f32
    %48 = vector.broadcast %cst_18 : f32 to vector<128x128xf32>
    %49 = arith.select %12, %47, %48 : vector<128x128xi1>, vector<128x128xf32>
    %c16_i32_19 = arith.constant 16 : i32
    %50 = tpu.dynamic_rotate %46 by %c16_i32_19 dim 0 : vector<128x128xf32>, i32 -> vector<128x128xf32>
    %cst_20 = arith.constant 0.000000e+00 : f32
    %51 = vector.broadcast %cst_20 : f32 to vector<128x128xf32>
    %52 = arith.select %12, %50, %51 : vector<128x128xi1>, vector<128x128xf32>
    %c15_i32_21 = arith.constant 15 : i32
    %53 = tpu.dynamic_rotate %46 by %c15_i32_21 dim 0 : vector<128x128xf32>, i32 -> vector<128x128xf32>
    %cst_22 = arith.constant 0.000000e+00 : f32
    %54 = vector.broadcast %cst_22 : f32 to vector<128x128xf32>
    %55 = arith.select %12, %53, %54 : vector<128x128xi1>, vector<128x128xf32>
    %c1_i32_23 = arith.constant 1 : i32
    %56 = tpu.dynamic_rotate %46 by %c1_i32_23 dim 0 : vector<128x128xf32>, i32 -> vector<128x128xf32>
    %c127_i32_24 = arith.constant 127 : i32
    %57 = tpu.dynamic_rotate %46 by %c127_i32_24 dim 0 : vector<128x128xf32>, i32 -> vector<128x128xf32>
    %c113_i32_25 = arith.constant 113 : i32
    %58 = tpu.dynamic_rotate %46 by %c113_i32_25 dim 0 : vector<128x128xf32>, i32 -> vector<128x128xf32>
    %cst_26 = arith.constant 0.000000e+00 : f32
    %59 = vector.broadcast %cst_26 : f32 to vector<128x128xf32>
    %60 = arith.select %15, %58, %59 : vector<128x128xi1>, vector<128x128xf32>
    %c112_i32_27 = arith.constant 112 : i32
    %61 = tpu.dynamic_rotate %46 by %c112_i32_27 dim 0 : vector<128x128xf32>, i32 -> vector<128x128xf32>
    %cst_28 = arith.constant 0.000000e+00 : f32
    %62 = vector.broadcast %cst_28 : f32 to vector<128x128xf32>
    %63 = arith.select %15, %61, %62 : vector<128x128xi1>, vector<128x128xf32>
    %c111_i32_29 = arith.constant 111 : i32
    %64 = tpu.dynamic_rotate %46 by %c111_i32_29 dim 0 : vector<128x128xf32>, i32 -> vector<128x128xf32>
    %cst_30 = arith.constant 0.000000e+00 : f32
    %65 = vector.broadcast %cst_30 : f32 to vector<128x128xf32>
    %66 = arith.select %15, %64, %65 : vector<128x128xi1>, vector<128x128xf32>
    %67 = tpu.concatenate %49, %52, %55, %56, %46, %57, %60, %63, %66 in 1 : vector<128x128xf32>, vector<128x128xf32>, vector<128x128xf32>, vector<128x128xf32>, vector<128x128xf32>, vector<128x128xf32>, vector<128x128xf32>, vector<128x128xf32>, vector<128x128xf32> -> vector<128x1152xf32>
    %68 = arith.truncf %67 : vector<128x1152xf32> to vector<128x1152xbf16>
    %c0_31 = arith.constant 0 : index
    %c0_32 = arith.constant 0 : index
    %69 = vector.load %arg4[%c0_31, %c0_32] : memref<1152x128xbf16, #tpu.memory_space<vmem>>, vector<1152x128xbf16>
    %cst_33 = arith.constant dense<0.000000e+00> : vector<128x128xf32>
    %70 = tpu.matmul %68, %69, %cst_33 {dimension_numbers = #tpu.dot_dimension_numbers<[1], [0], [0], [1], [0, 0, 1, 1], [], []>} : vector<128x1152xbf16>, vector<1152x128xbf16>, vector<128x128xf32> -> vector<128x128xf32>
    %c0_34 = arith.constant 0 : index
    %c0_35 = arith.constant 0 : index
    %71 = vector.load %arg5[%c0_34, %c0_35] : memref<1x128xf32, #tpu.memory_space<vmem>>, vector<1x128xf32>
    %72 = vector.broadcast %71 : vector<1x128xf32> to vector<128x128xf32>
    %73 = arith.addf %70, %72 : vector<128x128xf32>
    %cst_36 = arith.constant 0.000000e+00 : f32
    %74 = vector.broadcast %cst_36 : f32 to vector<128x128xf32>
    %75 = arith.maximumf %73, %74 : vector<128x128xf32>
    %cst_37 = arith.constant 0.000000e+00 : f32
    %76 = vector.broadcast %cst_37 : f32 to vector<128x128xf32>
    %77 = arith.select %9, %75, %76 : vector<128x128xi1>, vector<128x128xf32>
    %cst_38 = arith.constant dense<0.000000e+00> : vector<128xf32>
    %78 = vector.multi_reduction <add>, %77, %cst_38 [0] : vector<128x128xf32> to vector<128xf32>
    %79 = vector.shape_cast %78 : vector<128xf32> to vector<1x128xf32>
    %cst_39 = arith.constant 1.562500e-02 : f32
    %80 = vector.broadcast %cst_39 : f32 to vector<1x128xf32>
    %81 = arith.mulf %79, %80 : vector<1x128xf32>
    %c0_40 = arith.constant 0 : index
    %c0_41 = arith.constant 0 : index
    %82 = vector.load %arg6[%c0_40, %c0_41] : memref<128x256xf32, #tpu.memory_space<vmem>>, vector<128x256xf32>
    %cst_42 = arith.constant dense<0.000000e+00> : vector<1x256xf32>
    %83 = tpu.matmul %81, %82, %cst_42 {dimension_numbers = #tpu.dot_dimension_numbers<[1], [0], [0], [1], [0, 0, 1, 1], [], []>} : vector<1x128xf32>, vector<128x256xf32>, vector<1x256xf32> -> vector<1x256xf32>
    %c0_43 = arith.constant 0 : index
    %c0_44 = arith.constant 0 : index
    %84 = vector.load %arg7[%c0_43, %c0_44] : memref<1x256xf32, #tpu.memory_space<vmem>>, vector<1x256xf32>
    %85 = arith.addf %83, %84 : vector<1x256xf32>
    %cst_45 = arith.constant 0.000000e+00 : f32
    %86 = vector.broadcast %cst_45 : f32 to vector<1x256xf32>
    %87 = arith.maximumf %85, %86 : vector<1x256xf32>
    %c0_46 = arith.constant 0 : index
    %c0_47 = arith.constant 0 : index
    %88 = vector.load %arg8[%c0_46, %c0_47] : memref<256x64xf32, #tpu.memory_space<vmem>>, vector<256x64xf32>
    %cst_48 = arith.constant dense<0.000000e+00> : vector<1x64xf32>
    %89 = tpu.matmul %87, %88, %cst_48 {dimension_numbers = #tpu.dot_dimension_numbers<[1], [0], [0], [1], [0, 0, 1, 1], [], []>} : vector<1x256xf32>, vector<256x64xf32>, vector<1x64xf32> -> vector<1x64xf32>
    %c0_49 = arith.constant 0 : index
    %c0_50 = arith.constant 0 : index
    %90 = vector.load %arg9[%c0_49, %c0_50] : memref<1x64xf32, #tpu.memory_space<vmem>>, vector<1x64xf32>
    %91 = arith.addf %89, %90 : vector<1x64xf32>
    %cst_51 = arith.constant 0.000000e+00 : f32
    %92 = vector.broadcast %cst_51 : f32 to vector<1x64xf32>
    %93 = arith.maximumf %91, %92 : vector<1x64xf32>
    %c0_52 = arith.constant 0 : index
    %c0_53 = arith.constant 0 : index
    %94 = vector.load %arg10[%c0_52, %c0_53] : memref<64x3xf32, #tpu.memory_space<vmem>>, vector<64x3xf32>
    %cst_54 = arith.constant dense<0.000000e+00> : vector<1x3xf32>
    %95 = tpu.matmul %93, %94, %cst_54 {dimension_numbers = #tpu.dot_dimension_numbers<[1], [0], [0], [1], [0, 0, 1, 1], [], []>} : vector<1x64xf32>, vector<64x3xf32>, vector<1x3xf32> -> vector<1x3xf32>
    %c0_55 = arith.constant 0 : index
    %c0_56 = arith.constant 0 : index
    %96 = vector.load %arg11[%c0_55, %c0_56] : memref<1x3xf32, #tpu.memory_space<vmem>>, vector<1x3xf32>
    %97 = arith.addf %95, %96 : vector<1x3xf32>
    %c0_57 = arith.constant 0 : index
    %c0_58 = arith.constant 0 : index
    %c0_59 = arith.constant 0 : index
    %98 = vector.load %arg12[%c0_57, %c0_58, %c0_59] : memref<1x1x3xf32, #tpu.memory_space<vmem>>, vector<1x1x3xf32>
    %99 = vector.shape_cast %98 : vector<1x1x3xf32> to vector<1x3xf32>
    %100 = vector.shape_cast %97 : vector<1x3xf32> to vector<1x1x3xf32>
    tpu.vector_store %arg12[%c0_57, %c0_58, %c0_59], %100 {strides = array<i32>} : memref<1x1x3xf32, #tpu.memory_space<vmem>>, vector<1x1x3xf32>,
    return
  }
  func.func @transform_0(%arg0: i32) -> (i32, i32, i32, i32) {
    %c0_i32 = arith.constant 0 : i32
    %c0_i32_0 = arith.constant 0 : i32
    %c0_i32_1 = arith.constant 0 : i32
    %c0_i32_2 = arith.constant 0 : i32
    return %arg0, %c0_i32, %c0_i32_0, %c0_i32_1 : i32, i32, i32, i32
  }
  func.func @transform_1(%arg0: i32) -> (i32, i32) {
    %c0_i32 = arith.constant 0 : i32
    %c0_i32_0 = arith.constant 0 : i32
    %c0_i32_1 = arith.constant 0 : i32
    return %c0_i32, %c0_i32_0 : i32, i32
  }
  func.func @transform_2(%arg0: i32) -> (i32, i32) {
    %c0_i32 = arith.constant 0 : i32
    %c0_i32_0 = arith.constant 0 : i32
    %c0_i32_1 = arith.constant 0 : i32
    return %c0_i32, %c0_i32_0 : i32, i32
  }
  func.func @transform_3(%arg0: i32) -> (i32, i32) {
    %c0_i32 = arith.constant 0 : i32
    %c0_i32_0 = arith.constant 0 : i32
    %c0_i32_1 = arith.constant 0 : i32
    return %c0_i32, %c0_i32_0 : i32, i32
  }
  func.func @transform_4(%arg0: i32) -> (i32, i32) {
    %c0_i32 = arith.constant 0 : i32
    %c0_i32_0 = arith.constant 0 : i32
    %c0_i32_1 = arith.constant 0 : i32
    return %c0_i32, %c0_i32_0 : i32, i32
  }
  func.func @transform_5(%arg0: i32) -> (i32, i32) {
    %c0_i32 = arith.constant 0 : i32
    %c0_i32_0 = arith.constant 0 : i32
    %c0_i32_1 = arith.constant 0 : i32
    return %c0_i32, %c0_i32_0 : i32, i32
  }
  func.func @transform_6(%arg0: i32) -> (i32, i32) {
    %c0_i32 = arith.constant 0 : i32
    %c0_i32_0 = arith.constant 0 : i32
    %c0_i32_1 = arith.constant 0 : i32
    return %c0_i32, %c0_i32_0 : i32, i32
  }
  func.func @transform_7(%arg0: i32) -> (i32, i32) {
    %c0_i32 = arith.constant 0 : i32
    %c0_i32_0 = arith.constant 0 : i32
    %c0_i32_1 = arith.constant 0 : i32
    return %c0_i32, %c0_i32_0 : i32, i32
  }
  func.func @transform_8(%arg0: i32) -> (i32, i32) {
    %c0_i32 = arith.constant 0 : i32
    %c0_i32_0 = arith.constant 0 : i32
    %c0_i32_1 = arith.constant 0 : i32
    return %c0_i32, %c0_i32_0 : i32, i32
  }
  func.func @transform_9(%arg0: i32) -> (i32, i32) {
    %c0_i32 = arith.constant 0 : i32
    %c0_i32_0 = arith.constant 0 : i32
    %c0_i32_1 = arith.constant 0 : i32
    return %c0_i32, %c0_i32_0 : i32, i32
  }
  func.func @transform_10(%arg0: i32) -> (i32, i32) {
    %c0_i32 = arith.constant 0 : i32
    %c0_i32_0 = arith.constant 0 : i32
    %c0_i32_1 = arith.constant 0 : i32
    return %c0_i32, %c0_i32_0 : i32, i32
  }
  func.func @transform_11(%arg0: i32) -> (i32, i32, i32) {
    %c0_i32 = arith.constant 0 : i32
    %c0_i32_0 = arith.constant 0 : i32
    %c0_i32_1 = arith.constant 0 : i32
    return %arg0, %c0_i32, %c0_i32_0 : i32, i32, i32
  }
}

</mosaic_0001>

<bundles_post_ra>
// kernel: forward.1
= control target key start
LH: loop header
LB: loop body
LE: loop exit
PB: predicated region body
PF: predicated region fallthrough
CT: control target
= control target key end

     0   :  { %16 = vsyncpa [#allocation3], 0  ;;  %s5873_s0 = inlined_call_operand.vmem [shape: f32[2,8,8,128], index: 0, kind: input, shape index: {}]   ;;  %s5874_s1 = inlined_call_operand.hbm [shape: bf16[1152,128], index: 1, kind: input, shape index: {}]   ;;  %s5875_s2 = inlined_call_operand.vmem [shape: f32[1,128], index: 2, kind: input, shape index: {}]   ;;  %s5876_s3 = inlined_call_operand.hbm [shape: bf16[1152,128], index: 3, kind: input, shape index: {}]   ;;  %s5877_s4 = inlined_call_operand.vmem [shape: f32[1,128], index: 4, kind: input, shape index: {}]   ;;  %s5878_s5 = inlined_call_operand.vmem [shape: f32[128,256], index: 5, kind: input, shape index: {}]   ;;  %s5879_s6 = inlined_call_operand.vmem [shape: f32[1,256], index: 6, kind: input, shape index: {}]   ;;  %s5880_s7 = inlined_call_operand.vmem [shape: f32[256,64], index: 7, kind: input, shape index: {}]   ;;  %s5881_s8 = inlined_call_operand.vmem [shape: f32[1,64], index: 8, kind: input, shape index: {}]   ;;  %s5882_s9 = inlined_call_operand.vmem [shape: f32[64,3], index: 9, kind: input, shape index: {}]   ;;  %s5883_s10 = inlined_call_operand.vmem [shape: f32[1,3], index: 10, kind: input, shape index: {}]   ;;  %s5884_s11 = inlined_call_operand.hbm [shape: f32[2,1,3], index: 11, kind: output, shape index: {}]  }
   0x1   :  { %17 = vsyncpa [#allocation6], 0 }
   0x2   :  { %18 = vsyncpa [#allocation4], 0 }
   0x3   :  { %20 = vsyncpa [#allocation4 + $0x1], 0  ;;  %s4867_s17 = smov 0   ;;  %s4869_s18 = smov 0  }
   0x4   :  { %s4871_s19 = smov 0   ;;  %s4873_s20 = smov 0  }
   0x5 LB: > { %5893 = sst [smem:[#allocation11_spill]] %s4785_s17  ;;  %s4888_s21 = sadd.s32 4294967295, %s4797_s20   ;;  %s4797_s20 = sphi %s4873_s20, %s5917_s20   ;;  %s4793_s19 = sphi %s4871_s19, %s5919_s19   ;;  %s4789_s18 = sphi %s4869_s18, %s5921_s18   ;;  %s4785_s17 = sphi %s4867_s17, %s5920_s17  }
   0x6   : > { %5894 = sst [smem:[#allocation12_spill]] %s4793_s19  ;;  %s3378_s22 = sadd.s32 4294967294, %s4797_s20  }
   0x7   : > { %s4892_s23 = sadd.s32 1, %s4797_s20   ;;  %s269_s24 = sadd.s32 1, %s4793_s19 }
   0x8   : > { %5895 = sst [smem:[#allocation13_spill]] %s4892_s23  ;;  %s266_s25 = ssub.s32 %s4797_s20, %s4892_s23 }
   0x9   : > { %p279_p0 = scmp.ne.s32.totalorder %s4793_s19, %s4789_s18  ;;  %p267_p1 = scmp.eq.s32.totalorder %s266_s25, 0 }
   0xa   : > { %p280_p2 = scmp.eq.s32.totalorder %s4888_s21, 1  ;;  %p285_p3 = scmp.ne.s32.totalorder %s4789_s18, %s4785_s17 }
   0xb   : > { %p286_p4 = scmp.eq.s32.totalorder %s3378_s22, 1  ;;  %p3379_p7 = scmp.ge.s32.totalorder %s4797_s20, 1 }
   0xc   : > { %s4903_s26 = scalar_select %p267_p1, %s4793_s19, %s269_s24  }
   0xd   : > { %p4905_p5 = por %p280_p2, %p279_p0  ;;  %p4909_p6 = por %p286_p4, %p285_p3 }
   0xe   : > { %5896 = sst [smem:[#allocation14_spill]] %s4903_s26  ;;  %p293_p8 = scmp.lt.s32.totalorder %s4797_s20, 3 }
   0xf   : > { %s5897_s27 = scalar_select %p4905_p5, 1, 0 }
  0x10   : > { %s5898_s28 = scalar_select %p4909_p6, 1, 0 }
  0x11   : > { %p5886_p9 = scmp.eq.s32.totalorder %s4888_s21, 0  ;;  %p4916_p10 = pnand %p3379_p7, %p293_p8 }
  0x12   : > { %5899 = sst [smem:[#allocation15_spill]] %s5898_s28  ;;  %s4799_s30 = smov [#allocation2]  }
  0x13   : > { %s5900_s29 = scalar_select %p4916_p10, 1, 0 }
  0x14   : > { %s305_s12 = sshll.u32 %s4799_s30, 4  ;;  %p4472_p11 = pneg %p4916_p10  ;;  %s306_s12 = int_to_ptr.vmem [resolvable:$true] %s305_s12 }
  0x15   : > { %s4800_s14 = smov [#allocation5]   ;;  %s4671_s24 = scalar_lea.hbm %s5874_s1, 9216 }
  0x16   : > { %p4924_p12 = pnand %p5886_p9, %p4472_p11  ;;  %s321_s15 = sshll.u32 %s4800_s14, 4  ;;  %s4928_s15 = int_to_ptr.vmem [resolvable:$true] %s321_s15 }
  0x17   : > { %p4672_p13 = scmp.ne.s32.totalorder %s5874_s1, %s4671_s24  ;;  %p4678_p3 = scmp.lt.u32.totalorder %s4671_s24, %s5874_s1 }
  0x18   : > { %p4673_p0 = pneg %p4924_p12 }
  0x1a   : > { %p4674_p1 = pnand %p4673_p0, %p4672_p13 }
  0x1c   : > { %p4675_p2 = pneg %p4674_p1 }
  0x1e   : > { %p4680_p4 = pnand %p4678_p3, %p4675_p2 }
  0x20   : > { %4683 = shalt.err (!%p4680_p4)
}
  0x21   : > { %s4684_s14 = scalar_lea.vmem %s306_s12, 9216  ;;  %p4692_p9 = scmp.lt.s32.totalorder %s306_s12, %s306_s12 }
  0x22   : > { %p4685_p7 = scmp.ne.s32.totalorder %s306_s12, %s4684_s14  ;;  %p4693_p6 = scmp.lt.s32.totalorder %s4684_s14, %s4684_s14 }
  0x24   : > { %p4687_p8 = pnand %p4685_p7, %p4673_p0  ;;  %p4694_p5 = por %p4693_p6, %p4692_p9 }
  0x26   : > { %p4688_p11 = pneg %p4687_p8 }
  0x28   : > { %p4695_p10 = pnand %p4694_p5, %p4688_p11 }
  0x2a   : > { %4698 = shalt.err (!%p4695_p10)
}
  0x2b   : > { %s4801_s16 = smov 64   ;;  %s4802_s22 = smov 4  }
  0x2c   : > { %4475 = dma.hbm_to_vmem [thread:$0]  (!%p4924_p12), %s5874_s1, 9216, %s306_s12, [#allocation3], %s4801_s16, %s4801_s16, %s4802_s22  }
  0x2d   : > { %s4699_s30 = scalar_lea.hbm %s5876_s3, 9216 }
  0x2e   : > { %p4700_p13 = scmp.ne.s32.totalorder %s5876_s3, %s4699_s30  ;;  %p4706_p9 = scmp.lt.u32.totalorder %s4699_s30, %s5876_s3 }
  0x30   : > { %p4702_p5 = pnand %p4700_p13, %p4673_p0 }
  0x32   : > { %p4703_p6 = pneg %p4702_p5 }
  0x34   : > { %p4708_p10 = pnand %p4706_p9, %p4703_p6 }
  0x36   : > { %4711 = shalt.err (!%p4708_p10)
}
  0x37   : > { %s4712_s12 = scalar_lea.vmem %s4928_s15, 9216  ;;  %p4720_p4 = scmp.lt.s32.totalorder %s4928_s15, %s4928_s15 }
  0x38   : > { %p4713_p1 = scmp.ne.s32.totalorder %s4928_s15, %s4712_s12  ;;  %p4721_p7 = scmp.lt.s32.totalorder %s4712_s12, %s4712_s12 }
  0x3a   : > { %p4715_p2 = pnand %p4713_p1, %p4673_p0  ;;  %p4722_p8 = por %p4721_p7, %p4720_p4 }
  0x3c   : > { %p4716_p3 = pneg %p4715_p2 }
  0x3e   : > { %p4723_p11 = pnand %p4722_p8, %p4716_p3 }
  0x40   : > { %4726 = shalt.err (!%p4723_p11)
}
  0x41   : > { %4478 = dma.hbm_to_vmem [thread:$0]  (!%p4924_p12), %s5876_s3, 9216, %s4928_s15, [#allocation6], %s4801_s16, %s4801_s16, %s4802_s22  }
  0x42   : > { %p5902_p13 = scmp.ne.s32.totalorder %s5900_s29, 0 }
  0x43   : > { %p5903_p5 = scmp.eq.s32.totalorder (!%p5902_p13), %s4888_s21, 0 }
  0x44   : > { %366 = sbr.rel (%p5902_p13) target bundleno = 1507 (0x5e3), region = 64 }
  0x4b   : > { %4772 = dma.done.wait (%p5903_p5), [#allocation3], 9216   ;;  %p5904_p0 = pmov %p5903_p5 }
  0x4d   : > { %4774 = vsyncadd (%p5904_p0), [#allocation3], 4294958080  ;;  %p5905_p6 = pmov %p5904_p0 }
  0x4e   : > { %p5906_p9 = pmov %p5904_p0 }
  0x4f   : > { %4776 = dma.done.wait (%p5905_p6), [#allocation6], 9216  }
  0x50   : > { %4778 = vsyncadd (%p5906_p9), [#allocation6], 4294958080  ;;  %v4803_v0 = vmov 0.0|0.0   ;;  %v4527_v1 = vld [vmem:[#allocation2 + $0x40] sm:$0xff]   ;;  %v4531_v5 = vld [vmem:[#allocation2 + $0x48] sm:$0xff]   ;;  %v423_v7 = vlaneseq  ;;  %p409_p12 = scmp.lt.s32.totalorder %s4888_s21, 1 }
  0x51   : > { %1197 = vmatprep.mubr.bf16.mxu0 %v4803_v0  ;;  %v4528_v2 = vld [vmem:[#allocation2] sm:$0xff]   ;;  %3715 = vmatprep.subr.bf16.mxu0 %v4527_v1  ;;  %v4532_v6 = vld [vmem:[#allocation2 + $0x8] sm:$0xff]   ;;  %v4535_v10 = vld [vmem:[#allocation2 + $0x50] sm:$0xff]   ;;  %v4804_v41 = vmov 0.0   ;;  %vm4805_vm6 = vmmov 0   ;;  %vm3212_vm7 = vcmask 523264  }
  0x52   : > { %v4529_v3 = vld [vmem:[#allocation2 + $0xc0] sm:$0xff]   ;;  %3716 = vmatpush3.bf16.msra.mxu0 %v4528_v2  ;;  %v4533_v8 = vld [vmem:[#allocation2 + $0xc8] sm:$0xff]   ;;  %v4536_v11 = vld [vmem:[#allocation2 + $0x10] sm:$0xff]   ;;  %v4988_v12 = vshrl.u32 %v423_v7, 7  ;;  %s410_s28 = scalar_select %p409_p12, %s4888_s21, 1  ;;  %vm3286_vm8 = vcmask 16384  }
  0x53   : > { %v4530_v4 = vld [vmem:[#allocation2 + $0x80] sm:$0xff]   ;;  %3779 = vmatprep.subr.bf16.mxu1 %v4529_v3  ;;  %3717 = vmatprep.subr.bf16.mxu0 %v4531_v5  ;;  %v4534_v9 = vld [vmem:[#allocation2 + $0x88] sm:$0xff]   ;;  %v4537_v13 = vld [vmem:[#allocation2 + $0xd0] sm:$0xff]   ;;  %s407_s26 = sand.u32 1, %s4789_s18   ;;  %s3711_s30 = sshll.u32 %s4888_s21, 4 }
  0x54   : > { %3780 = vmatpush3.bf16.msra.mxu1 %v4530_v4  ;;  %v4538_v14 = vld [vmem:[#allocation2 + $0x90] sm:$0xff]   ;;  %v4539_v15 = vld [vmem:[#allocation2 + $0x58] sm:$0xff]   ;;  %vm436_vm0 = vcmp.lt.s32.totalorder %v4988_v12, 1  ;;  %v4543_v19 = vld [vmem:[#allocation2 + $0x60] sm:$0xff]   ;;  %s3714_s29 = sshll.u32 %s410_s28, 6  ;;  %vm485_vm3 = vcmp.lt.s32.totalorder %v4988_v12, 7  ;;  %s5831_s28 = scalar_lea.hbm %s5884_s11, %s3711_s30 }
  0x55   : > { %3781 = vmatprep.subr.bf16.mxu1 %v4533_v8  ;;  %v4540_v16 = vld [vmem:[#allocation2 + $0x18] sm:$0xff]   ;;  %vm4993_vm1 = vmneg %vm436_vm0  ;;  %v4544_v21 = vld [vmem:[#allocation2 + $0x20] sm:$0xff]   ;;  %s5010_s16 = scalar_lea.vmem %s5873_s0, %s3714_s29  ;;  %s408_s14 = scalar_lea.vmem [#allocation7], %s407_s26 }
  0x56   : > { %3718 = vmatpush3.bf16.msra.mxu0 %v4532_v6  ;;  %v4541_v17 = vld [vmem:[#allocation2 + $0xd8] sm:$0xff]   ;;  %v4545_v22 = vld [vmem:[#allocation2 + $0xe0] sm:$0xff]   ;;  %v4547_v24 = vld [vmem:[#allocation2 + $0x68] sm:$0xff]   ;;  %s3301_s12 = sshll.u32 %s408_s14, 4  ;;  %s3289_s29 = scalar_lea.sflag [#allocation4], %s407_s26  ;;  %s5833_s12 = int_to_ptr.vmem [resolvable:$true] %s3301_s12 }
  0x57   : > { %3719 = vmatprep.subr.bf16.mxu0 %v4535_v10  ;;  %v4542_v18 = vld [vmem:[#allocation2 + $0x98] sm:$0xff]   ;;  %v4546_v23 = vld [vmem:[#allocation2 + $0xa0] sm:$0xff]   ;;  %v4548_v25 = vld [vmem:[#allocation2 + $0x28] sm:$0xff]   ;;  %s4727_s13 = scalar_lea.vmem %s5833_s12, 16  ;;  %p5913_p1 = scmp.ne.s32.totalorder %s5897_s27, 0 }
  0x58   : > { %3782 = vmatpush3.bf16.msra.mxu1 %v4534_v9  ;;  %v4549_v26 = vld [vmem:[#allocation2 + $0xe8] sm:$0xff]   ;;  %v4551_v28 = vld [vmem:[#allocation2 + $0x70] sm:$0xff]   ;;  %vm5003_vm2 = vmpackc.low %vm436_vm0, %vm4993_vm1  ;;  %p4728_p10 = scmp.ne.s32.totalorder %s5833_s12, %s4727_s13  ;;  %s4806_s21 = smov [#allocation7]  }
  0x59   : > { %3783 = vmatprep.subr.bf16.mxu1 %v4537_v13  ;;  %v4550_v27 = vld [vmem:[#allocation2 + $0xa8] sm:$0xff]   ;;  %v4552_v29 = vld [vmem:[#allocation2 + $0x30] sm:$0xff]   ;;  %v4555_v33 = vld [vmem:[#allocation2 + $0x78] sm:$0xff]   ;;  %s4731_s15 = sshll.u32 %s4806_s21, 4  ;;  %s4732_s15 = int_to_ptr.vmem [resolvable:$false] %s4731_s15 }
  0x5a   : > { %3720 = vmatpush3.bf16.msra.mxu0 %v4536_v11  ;;  %v4553_v30 = vld [vmem:[#allocation2 + $0xf0] sm:$0xff]   ;;  %v4556_v34 = vld [vmem:[#allocation2 + $0x38] sm:$0xff]   ;;  %v4559_v37 = vld [vmem:[#allocation2 + $0x140] sm:$0xff]   ;;  %p4729_p2 = pnand %p4728_p10, %p5913_p1  ;;  %p4734_p4 = scmp.lt.s32.totalorder %s5833_s12, %s4732_s15 }
  0x5b   : > { %3721 = vmatprep.subr.bf16.mxu0 %v4539_v15  ;;  %v4554_v31 = vld [vmem:[#allocation2 + $0xb0] sm:$0xff]   ;;  %v4557_v35 = vld [vmem:[#allocation2 + $0xf8] sm:$0xff]   ;;  %v5013_v38 = vld [vmem:[%s5010_s16] sm:$0xff] }
  0x5c   : > { %3784 = vmatpush3.bf16.msra.mxu1 %v4538_v14  ;;  %v4558_v36 = vld [vmem:[#allocation2 + $0xb8] sm:$0xff]   ;;  %v428_v39 = vrot.slane %v5013_v38, 7  ;;  %v4560_v40 = vld [vmem:[#allocation2 + $0x100] sm:$0xff]   ;;  %v5019_v42 = vpack.c.bf16 %v4804_v41, %v5013_v38  ;;  %v4561_v43 = vld [vmem:[#allocation2 + $0x148] sm:$0xff]   ;;  %v477_v51 = vrot.slane %v5013_v38, 1  ;;  %p4730_p3 = pneg %p4729_p2 }
  0x5d   : > { %3785 = vmatprep.subr.bf16.mxu1 %v4541_v17  ;;  %v416_v44 = vld [vmem:[%s5010_s16 + $0x8] sm:$0xff]  ;;  %v4563_v49 = vld [vmem:[#allocation2 + $0x150] sm:$0xff]   ;;  %vm3497_vm4 = vmneg %vm485_vm3 }
  0x5e   : > { %3722 = vmatpush3.bf16.msra.mxu0 %v4540_v16  ;;  %v3463_v45 = vpack.c.bf16 %v428_v39, %v428_v39  ;;  %v429_v46 = vrot.slane %v416_v44, 7  ;;  %v4562_v47 = vld [vmem:[#allocation2 + $0x108] sm:$0xff]   ;;  %v5029_v50 = vld [vmem:[%s5010_s16 + $0x10] sm:$0xff]  ;;  %v478_v52 = vrot.slane %v416_v44, 1  ;;  %v5036_v53 = vpack.c.bf16 %v4804_v41, %v416_v44  ;;  %v4565_v56 = vld [vmem:[#allocation2 + $0x158] sm:$0xff]  }
  0x5f   : > { %3723 = vmatprep.subr.bf16.mxu0 %v4543_v19  ;;  %v430_v54 = vrot.slane %v5029_v50, 7  ;;  %v4564_v55 = vld [vmem:[#allocation2 + $0x110] sm:$0xff]   ;;  %vm5046_vm5 = vmpackc.low %vm3497_vm4, %vm485_vm3  ;;  %v5056_v59 = vld [vmem:[%s5010_s16 + $0x18] sm:$0xff]  ;;  %v479_v2 = vrot.slane %v5029_v50, 1  ;;  %v5066_v3 = vpack.c.bf16 %v4804_v41, %v5029_v50 }
  0x60   : > { %3786 = vmatpush3.bf16.msra.mxu1 %v4542_v18  ;;  %3492 = vmatprep.mubr.msk.bf16.mxu1 %vm5003_vm2, %v3463_v45  ;;  %v5026_v48 = vpack.c.bf16 %v429_v46, %v429_v46  ;;  %v5052_v58 = vpack.c.bf16 %v478_v52, %v477_v51  ;;  %v4566_v60 = vld [vmem:[#allocation2 + $0x118] sm:$0xff]   ;;  %v4567_v62 = vld [vmem:[#allocation2 + $0x160] sm:$0xff]   ;;  %v4571_v4 = vld [vmem:[#allocation2 + $0x1c8] sm:$0xff]   ;;  %v431_v5 = vrot.slane %v5056_v59, 7  ;;  %v480_v17 = vrot.slane %v5056_v59, 1 }
  0x61   : > { %3787 = vmatprep.subr.bf16.mxu1 %v4545_v22  ;;  %v5058_v61 = vpack.c.bf16 %v430_v54, %v430_v54  ;;  %v4569_v63 = vld [vmem:[#allocation2 + $0x1c0] sm:$0xff]   ;;  %v4572_v7 = vld [vmem:[#allocation2 + $0x188] sm:$0xff]   ;;  %v4575_v9 = vld [vmem:[#allocation2 + $0x1d0] sm:$0xff]   ;;  %v5075_v10 = vpack.c.bf16 %v479_v2, %v478_v52  ;;  %v5089_v18 = vpack.c.bf16 %v4804_v41, %v5056_v59 }
  0x62   : > { %3724 = vmatpush3.bf16.msra.mxu0 %v4544_v21  ;;  %v4570_v1 = vld [vmem:[#allocation2 + $0x180] sm:$0xff]   ;;  %v4573_v8 = vld [vmem:[#allocation2 + $0x168] sm:$0xff]   ;;  %v5081_v13 = vpack.c.bf16 %v431_v5, %v431_v5  ;;  %v4576_v15 = vld [vmem:[#allocation2 + $0x190] sm:$0xff]  }
  0x63   : > { %3725 = vmatprep.subr.bf16.mxu0 %v4547_v24  ;;  %v4568_v6 = vld [vmem:[#allocation2 + $0x120] sm:$0xff]   ;;  %v4574_v14 = vld [vmem:[#allocation2 + $0x128] sm:$0xff]   ;;  %v4577_v16 = vld [vmem:[#allocation2 + $0x1d8] sm:$0xff]   ;;  %v5098_v24 = vpack.c.bf16 %v480_v17, %v479_v2 }
  0x64   : > { %3788 = vmatpush3.bf16.msra.mxu1 %v4546_v23  ;;  %v5079_v11 = vld [vmem:[%s5010_s16 + $0x20] sm:$0xff]  ;;  %v4579_v19 = vld [vmem:[#allocation2 + $0x170] sm:$0xff]   ;;  %v4578_v22 = vld [vmem:[#allocation2 + $0x198] sm:$0xff]  }
  0x65   : > { %3789 = vmatprep.subr.bf16.mxu1 %v4549_v26  ;;  %v432_v20 = vrot.slane %v5079_v11, 7  ;;  %v4580_v21 = vld [vmem:[#allocation2 + $0x130] sm:$0xff]   ;;  %v4581_v23 = vld [vmem:[#allocation2 + $0x1e0] sm:$0xff]   ;;  %v5134_v50 = vld [vmem:[%s5010_s16 + $0x38] sm:$0xff] }
  0x66   : > { %3726 = vmatpush3.bf16.msra.mxu0 %v4548_v25  ;;  %v420_v25 = vld [vmem:[%s5010_s16 + $0x28] sm:$0xff]  ;;  %v421_v39 = vld [vmem:[%s5010_s16 + $0x30] sm:$0xff]  ;;  %v4590_v52 = vld [vmem:[#allocation2 + $0x1b8] sm:$0xff]   ;;  %v484_v59 = vrot.slane %v5134_v50, 1  ;;  %s4733_s16 = scalar_lea.vmem %s4732_s15, 32 }
  0x67   : > { %3727 = vmatprep.subr.bf16.mxu0 %v4551_v28  ;;  %v5102_v26 = vpack.c.bf16 %v432_v20, %v432_v20  ;;  %v4585_v28 = vld [vmem:[#allocation2 + $0x178] sm:$0xff]   ;;  %v4588_v44 = vld [vmem:[#allocation2 + $0x1b0] sm:$0xff]   ;;  %v482_v46 = vrot.slane %v420_v25, 1  ;;  %v483_v54 = vrot.slane %v421_v39, 1  ;;  %v4599_v32 = vld [vmem:[#allocation5 + $0x40] sm:$0xff]   ;;  %p4735_p7 = scmp.lt.s32.totalorder %s4733_s16, %s4727_s13 }
  0x68   : > { %3790 = vmatpush3.bf16.msra.mxu1 %v4550_v27  ;;  %v4582_v27 = vld [vmem:[#allocation2 + $0x1a0] sm:$0xff]   ;;  %v4593_v5 = vld [vmem:[#allocation2 + $0x210] sm:$0xff]  }
  0x69   : > { %3791 = vmatprep.subr.bf16.mxu1 %v4553_v30  ;;  %v481_v30 = vrot.slane %v5079_v11, 1  ;;  %v5164_v2 = vpack.c.bf16 %v484_v59, %v483_v54  ;;  %v4600_v38 = vld [vmem:[#allocation5] sm:$0xff]   ;;  %v4617_v20 = vld [vmem:[#allocation5 + $0xd0] sm:$0xff]   ;;  %p4736_p8 = por %p4735_p7, %p4734_p4 }
  0x6a   : > { %3728 = vmatpush3.bf16.msra.mxu0 %v4552_v29  ;;  %v4583_v29 = vld [vmem:[#allocation2 + $0x1e8] sm:$0xff]   ;;  %v4607_v57 = vld [vmem:[#allocation5 + $0x60] sm:$0xff]  }
  0x6b   : > { %3729 = vmatprep.subr.bf16.mxu0 %v4555_v33  ;;  %v433_v33 = vrot.slane %v420_v25, 7  ;;  %p4737_p11 = pnand %p4736_p8, %p4730_p3 }
  0x6c   : > { %3792 = vmatpush3.bf16.msra.mxu1 %v4554_v31  ;;  %v5110_v31 = vpack.c.bf16 %v4804_v41, %v5079_v11  ;;  %v4606_v11 = vld [vmem:[#allocation5 + $0x18] sm:$0xff]  }
  0x6d   : > { %3793 = vmatprep.subr.bf16.mxu1 %v4557_v35  ;;  %v4584_v35 = vld [vmem:[#allocation2 + $0x1a8] sm:$0xff]  }
  0x6e   : > { %3730 = vmatpush3.bf16.msra.mxu0 %v4556_v34  ;;  %v4586_v34 = vld [vmem:[#allocation2 + $0x138] sm:$0xff]  }
  0x6f   : > { %3843 = vmatprep.subr.bf16.mxu0 %v4559_v37  ;;  %v5118_v37 = vpack.c.bf16 %v481_v30, %v480_v17  ;;  %v4610_v17 = vld [vmem:[#allocation5 + $0x28] sm:$0xff]  }
  0x70   : > { %3794 = vmatpush3.bf16.msra.mxu1 %v4558_v36  ;;  %v4587_v36 = vld [vmem:[#allocation2 + $0x1f0] sm:$0xff]  }
  0x71   : > { %1198 = vmatmul.mubr.bf16.vlgmr.msra.gmra.mrb[0].mxu0 %v4803_v0  ;;  %3907 = vmatprep.subr.bf16.mxu1 %v4569_v63  ;;  %v5153_v63 = vpack.c.bf16 %v483_v54, %v482_v46 }
  0x72   : > { %3844 = vmatpush3.bf16.msra.mxu0 %v4560_v40  ;;  %1205 = vmatprep.mubr.bf16.mxu0 %v5019_v42  ;;  %v5122_v40 = vpack.c.bf16 %v433_v33, %v433_v33  ;;  %v4625_v33 = vld [vmem:[#allocation5 + $0xe8] sm:$0xff]  }
  0x73   : > { %3845 = vmatprep.subr.bf16.mxu0 %v4561_v43  ;;  %1295 = vmatmul.mubr.bf16.vlgmr.msra.gmra.mrb[0].mxu1 %v4803_v0  ;;  %v4591_v43 = vld [vmem:[#allocation2 + $0x200] sm:$0xff]  }
  0x74   : > { %3496 = vmatprep.mubr.msk.bf16.mxu1 %vm5003_vm2, %v5026_v48  ;;  %3908 = vmatpush3.bf16.msra.mxu1 %v4570_v1 }
  0x75   : > { %3909 = vmatprep.subr.bf16.mxu1 %v4571_v4  ;;  %v4592_v4 = vld [vmem:[#allocation2 + $0x208] sm:$0xff]  }
  0x76   : > { %3846 = vmatpush3.bf16.msra.mxu0 %v4562_v47  ;;  %v5128_v47 = vpack.c.bf16 %v4804_v41, %v420_v25  ;;  %v4620_v25 = vld [vmem:[#allocation5 + $0x98] sm:$0xff]  }
  0x77   : > { %3847 = vmatprep.subr.bf16.mxu0 %v4563_v49  ;;  %v434_v49 = vrot.slane %v421_v39, 7 }
  0x78   : > { %3910 = vmatpush3.bf16.msra.mxu1 %v4572_v7  ;;  %v4602_v7 = vld [vmem:[#allocation5 + $0x8] sm:$0xff]  }
  0x79   : > { %3464 = vmatmul.mubr.msk.bf16.gmra.mrb[4].mxu0 %vm5003_vm2, %v3463_v45  ;;  %3911 = vmatprep.subr.bf16.mxu1 %v4575_v9  ;;  %v4589_v45 = vld [vmem:[#allocation2 + $0x1f8] sm:$0xff]   ;;  %v4604_v9 = vld [vmem:[#allocation5 + $0x10] sm:$0xff]  }
  0x7a   : > { %1213 = vmatprep.mubr.bf16.mxu0 %v5036_v53  ;;  %3848 = vmatpush3.bf16.msra.mxu0 %v4564_v55  ;;  %v5139_v55 = vpack.c.bf16 %v482_v46, %v481_v30  ;;  %v4627_v46 = vld [vmem:[#allocation5 + $0x140] sm:$0xff]  }
  0x7b   : > { %3849 = vmatprep.subr.bf16.mxu0 %v4565_v56  ;;  %3500 = vmatmul.mubr.msk.bf16.gmra.mrb[4].mxu1 %vm5046_vm5, %v5052_v58  ;;  %v435_v56 = vrot.slane %v5134_v50, 7 }
  0x7c   : > { %3504 = vmatprep.mubr.msk.bf16.mxu1 %vm5003_vm2, %v5058_v61  ;;  %3912 = vmatpush3.bf16.msra.mxu1 %v4576_v15  ;;  %v4612_v15 = vld [vmem:[#allocation5 + $0x80] sm:$0xff]  }
  0x7d   : > { %3913 = vmatprep.subr.bf16.mxu1 %v4577_v16  ;;  %v3543_v1 = vpack.c.bf16 %v435_v56, %v435_v56  ;;  %v4609_v16 = vld [vmem:[#allocation5 + $0x68] sm:$0xff]  }
  0x7e   : > { %3850 = vmatpush3.bf16.msra.mxu0 %v4566_v60  ;;  %v3487_v60 = vpack.c.bf16 %v434_v49, %v434_v49  ;;  %v4630_v49 = vld [vmem:[#allocation5 + $0xb0] sm:$0xff]  }
  0x7f   : > { %3851 = vmatprep.subr.bf16.mxu0 %v4567_v62  ;;  %v568_v62 = vpack.c.bf16 %v4804_v41, %v421_v39 }
  0x80   : > { %3914 = vmatpush3.bf16.msra.mxu1 %v4578_v22  ;;  %v4615_v22 = vld [vmem:[#allocation5 + $0x70] sm:$0xff]  }
  0x81   : > { %3468 = vmatmul.mubr.msk.bf16.gmra.mrb[8].mxu0 %vm5003_vm2, %v5026_v48  ;;  %3915 = vmatprep.subr.bf16.mxu1 %v4581_v23  ;;  %v4616_v23 = vld [vmem:[#allocation5 + $0x30] sm:$0xff]  }
  0x82   : > { %1221 = vmatprep.mubr.bf16.mxu0 %v5066_v3  ;;  %3852 = vmatpush3.bf16.msra.mxu0 %v4568_v6  ;;  %v4594_v6 = vld [vmem:[#allocation2 + $0x218] sm:$0xff]  }
  0x83   : > { %3853 = vmatprep.subr.bf16.mxu0 %v4573_v8  ;;  %3508 = vmatmul.mubr.msk.bf16.gmra.mrb[8].mxu1 %vm5046_vm5, %v5075_v10  ;;  %v4603_v8 = vld [vmem:[#allocation5 + $0x50] sm:$0xff]  }
  0x84   : > { %3512 = vmatprep.mubr.msk.bf16.mxu1 %vm5003_vm2, %v5081_v13  ;;  %3916 = vmatpush3.bf16.msra.mxu1 %v4582_v27  ;;  %v4623_v27 = vld [vmem:[#allocation5 + $0xe0] sm:$0xff]  }
  0x85   : > { %3917 = vmatprep.subr.bf16.mxu1 %v4583_v29  ;;  %v4624_v29 = vld [vmem:[#allocation5 + $0xa0] sm:$0xff]  }
  0x86   : > { %3854 = vmatpush3.bf16.msra.mxu0 %v4574_v14  ;;  %v4611_v14 = vld [vmem:[#allocation5 + $0xc0] sm:$0xff]  }
  0x87   : > { %3855 = vmatprep.subr.bf16.mxu0 %v4579_v19  ;;  %v4614_v19 = vld [vmem:[#allocation5 + $0x88] sm:$0xff]  }
  0x88   : > { %3918 = vmatpush3.bf16.msra.mxu1 %v4584_v35 }
  0x89   : > { %3472 = vmatmul.mubr.msk.bf16.gmra.mrb[12].mxu0 %vm5003_vm2, %v5058_v61  ;;  %3919 = vmatprep.subr.bf16.mxu1 %v4587_v36 }
  0x8a   : > { %1229 = vmatprep.mubr.bf16.mxu0 %v5089_v18  ;;  %3856 = vmatpush3.bf16.msra.mxu0 %v4580_v21  ;;  %v4618_v21 = vld [vmem:[#allocation5 + $0x90] sm:$0xff]  }
  0x8b   : > { %3516 = vmatmul.mubr.msk.bf16.gmra.mrb[12].mxu1 %vm5046_vm5, %v5098_v24  ;;  %3857 = vmatprep.subr.bf16.mxu0 %v4585_v28  ;;  %v4622_v28 = vld [vmem:[#allocation5 + $0x38] sm:$0xff]  }
  0x8c   : > { %3520 = vmatprep.mubr.msk.bf16.mxu1 %vm5003_vm2, %v5102_v26  ;;  %3920 = vmatpush3.bf16.msra.mxu1 %v4588_v44  ;;  %v4628_v44 = vld [vmem:[#allocation5 + $0xf0] sm:$0xff]  }
  0x8d   : > { %3921 = vmatprep.subr.bf16.mxu1 %v4589_v45 }
  0x8e   : > { %3858 = vmatpush3.bf16.msra.mxu0 %v4586_v34  ;;  %v5255_v34 = vld [vmem:[%s5875_s2] ss:$0 sm:$0xff] }
  0x8f   : > { %4303 = vmatprep.subr.bf16.mxu0 %v4591_v43 }
  0x90   : > { %3922 = vmatpush3.bf16.msra.mxu1 %v4590_v52 }
  0x91   : > { %3476 = vmatmul.mubr.msk.bf16.gmra.mrb[16].mxu0 %vm5003_vm2, %v5081_v13  ;;  %3987 = vmatprep.subr.bf16.mxu1 %v4599_v32 }
  0x92   : > { %1237 = vmatprep.mubr.bf16.mxu0 %v5110_v31 }
  0x93   : > { %3524 = vmatmul.mubr.msk.bf16.gmra.mrb[16].mxu1 %vm5046_vm5, %v5118_v37 }
  0x94   : > { %3528 = vmatprep.mubr.msk.bf16.mxu1 %vm5003_vm2, %v5122_v40 }
  0x99   : > { %3480 = vmatmul.mubr.msk.bf16.gmra.mrb[20].mxu0 %vm5003_vm2, %v5102_v26 }
  0x9a   : > { %1245 = vmatprep.mubr.bf16.mxu0 %v5128_v47 }
  0x9b   : > { %3532 = vmatmul.mubr.msk.bf16.gmra.mrb[20].mxu1 %vm5046_vm5, %v5139_v55 }
  0x9c   : > { %3536 = vmatprep.mubr.msk.bf16.mxu1 %vm5003_vm2, %v3487_v60 }
  0xa1   : > { %3484 = vmatmul.mubr.msk.bf16.gmra.mrb[24].mxu0 %vm5003_vm2, %v5122_v40 }
  0xa2   : > { %1253 = vmatprep.mubr.bf16.mxu0 %v568_v62 }
  0xa3   : > { %3540 = vmatmul.mubr.msk.bf16.gmra.mrb[24].mxu1 %vm5046_vm5, %v5153_v63 }
  0xa4   : > { %3544 = vmatprep.mubr.msk.bf16.mxu1 %vm5003_vm2, %v3543_v1 }
  0xa9   : > { %3488 = vmatmul.mubr.msk.bf16.gmra.mrb[28].mxu0 %vm5003_vm2, %v3487_v60 }
  0xaa   : > { %3552 = vmatprep.mubr.msk.bf16.mxu0 %vm5046_vm5, %v5052_v58  ;;  %v4595_v58 = vld [vmem:[#allocation2 + $0x220] sm:$0xff]  }
  0xab   : > { %3548 = vmatmul.mubr.msk.bf16.gmra.mrb[28].mxu1 %vm5046_vm5, %v5164_v2 }
  0xac   : > { %1488 = vmatprep.mubr.bf16.mxu1 %v5036_v53 }
  0xb1   : > { %1392 = vmatmul.mubr.bf16.vlgmr.msra.gmra.mrb[32].mxu0 %v5019_v42  ;;  %v4596_v42 = vld [vmem:[#allocation2 + $0x228] sm:$0xff]  }
  0xb2   : > { %4304 = vmatpush3.bf16.msra.mxu0 %v4591_v43  ;;  %3556 = vmatprep.mubr.msk.bf16.mxu0 %vm5046_vm5, %v5075_v10 }
  0xb3   : > { %4305 = vmatprep.subr.bf16.mxu0 %v4592_v4  ;;  %3584 = vmatmul.mubr.msk.bf16.vlgmr.msra.gmra.mrb[32].mxu1 %vm5003_vm2, %v5026_v48  ;;  %v4597_v48 = vld [vmem:[#allocation2 + $0x230] sm:$0xff]  }
  0xb4   : > { %1496 = vmatprep.mubr.bf16.mxu1 %v5066_v3  ;;  %3988 = vmatpush3.bf16.msra.mxu1 %v4600_v38 }
  0xb6   : > { %4306 = vmatpush3.bf16.msra.mxu0 %v4592_v4 }
  0xb7   : > { %4307 = vmatprep.subr.bf16.mxu0 %v4593_v5 }
  0xb9   : > { %1400 = vmatmul.mubr.bf16.gmra.mrb[36].mxu0 %v5036_v53  ;;  %v4598_v53 = vld [vmem:[#allocation2 + $0x238] sm:$0xff]  }
  0xba   : > { %3560 = vmatprep.mubr.msk.bf16.mxu0 %vm5046_vm5, %v5098_v24  ;;  %4308 = vmatpush3.bf16.msra.mxu0 %v4593_v5 }
  0xbb   : > { %4309 = vmatprep.subr.bf16.mxu0 %v4594_v6  ;;  %3588 = vmatmul.mubr.msk.bf16.gmra.mrb[36].mxu1 %vm5003_vm2, %v5058_v61  ;;  %v574_v61 = vpack.c.bf16 %v4804_v41, %v5134_v50 }
  0xbc   : > { %1504 = vmatprep.mubr.bf16.mxu1 %v5089_v18 }
  0xbe   : > { %4310 = vmatpush3.bf16.msra.mxu0 %v4594_v6 }
  0xbf   : > { %4311 = vmatprep.subr.bf16.mxu0 %v4595_v58 }
  0xc1   : > { %1408 = vmatmul.mubr.bf16.gmra.mrb[40].mxu0 %v5066_v3  ;;  %v3579_v3 = vpack.c.bf16 %v477_v51, %v484_v59  ;;  %v4601_v51 = vld [vmem:[#allocation5 + $0x48] sm:$0xff]  }
  0xc2   : > { %3564 = vmatprep.mubr.msk.bf16.mxu0 %vm5046_vm5, %v5118_v37  ;;  %4312 = vmatpush3.bf16.msra.mxu0 %v4595_v58  ;;  %v4633_v58 = vld [vmem:[#allocation5 + $0x148] sm:$0xff]  }
  0xc3   : > { %4313 = vmatprep.subr.bf16.mxu0 %v4596_v42  ;;  %3592 = vmatmul.mubr.msk.bf16.gmra.mrb[40].mxu1 %vm5003_vm2, %v5081_v13  ;;  %v4608_v13 = vld [vmem:[#allocation5 + $0x20] sm:$0xff]  }
  0xc4   : > { %1512 = vmatprep.mubr.bf16.mxu1 %v5110_v31  ;;  %3989 = vmatprep.subr.bf16.mxu1 %v4601_v51 }
  0xc5   : > { %3990 = vmatpush3.bf16.msra.mxu1 %v4602_v7 }
  0xc6   : > { %4314 = vmatpush3.bf16.msra.mxu0 %v4596_v42  ;;  %3991 = vmatprep.subr.bf16.mxu1 %v4603_v8  ;;  %v4634_v42 = vld [vmem:[#allocation5 + $0x108] sm:$0xff]  }
  0xc7   : > { %4315 = vmatprep.subr.bf16.mxu0 %v4597_v48 }
  0xc9   : > { %1416 = vmatmul.mubr.bf16.gmra.mrb[44].mxu0 %v5089_v18  ;;  %3992 = vmatpush3.bf16.msra.mxu1 %v4604_v9  ;;  %v4613_v18 = vld [vmem:[#allocation5 + $0xc8] sm:$0xff]  }
  0xca   : > { %3568 = vmatprep.mubr.msk.bf16.mxu0 %vm5046_vm5, %v5139_v55  ;;  %4316 = vmatpush3.bf16.msra.mxu0 %v4597_v48 }
  0xcb   : > { %4317 = vmatprep.subr.bf16.mxu0 %v4598_v53  ;;  %3596 = vmatmul.mubr.msk.bf16.gmra.mrb[44].mxu1 %vm5003_vm2, %v5102_v26  ;;  %v4621_v26 = vld [vmem:[#allocation5 + $0x78] sm:$0xff]  }
  0xcc   : > { %1520 = vmatprep.mubr.bf16.mxu1 %v5128_v47 }
  0xce   : > { %4318 = vmatpush3.bf16.msra.mxu0 %v4598_v53 }
  0xcf   : > { %4051 = vmatprep.subr.bf16.mxu0 %v4611_v14 }
  0xd1   : > { %1424 = vmatmul.mubr.bf16.gmra.mrb[48].mxu0 %v5110_v31 }
  0xd2   : > { %3572 = vmatprep.mubr.msk.bf16.mxu0 %vm5046_vm5, %v5153_v63 }
  0xd3   : > { %3600 = vmatmul.mubr.msk.bf16.gmra.mrb[48].mxu1 %vm5003_vm2, %v5122_v40 }
  0xd4   : > { %1528 = vmatprep.mubr.bf16.mxu1 %v568_v62 }
  0xd9   : > { %1432 = vmatmul.mubr.bf16.gmra.mrb[52].mxu0 %v5128_v47  ;;  %v4629_v47 = vld [vmem:[#allocation5 + $0x100] sm:$0xff]  }
  0xda   : > { %3576 = vmatprep.mubr.msk.bf16.mxu0 %vm5046_vm5, %v5164_v2 }
  0xdb   : > { %3604 = vmatmul.mubr.msk.bf16.gmra.mrb[52].mxu1 %vm5003_vm2, %v3487_v60  ;;  %v4631_v60 = vld [vmem:[#allocation5 + $0xf8] sm:$0xff]  }
  0xdc   : > { %1536 = vmatprep.mubr.bf16.mxu1 %v574_v61 }
  0xe1   : > { %1440 = vmatmul.mubr.bf16.gmra.mrb[56].mxu0 %v568_v62 }
  0xe2   : > { %3580 = vmatprep.mubr.msk.bf16.mxu0 %vm5046_vm5, %v3579_v3 }
  0xe3   : > { %3608 = vmatmul.mubr.msk.bf16.gmra.mrb[56].mxu1 %vm5003_vm2, %v3543_v1  ;;  %v4632_v1 = vld [vmem:[#allocation5 + $0xb8] sm:$0xff]  }
  0xe4   : > { %1544 = vmatprep.mubr.bf16.mxu1 %v4803_v0 }
  0xe9   : > { %1448 = vmatmul.mubr.bf16.gmra.mrb[60].mxu0 %v574_v61 }
  0xea   : > { %4319 = vmatprep.mubr.msk.bf16.mxu0 %vm5046_vm5, %v5075_v10  ;;  %v4605_v10 = vld [vmem:[#allocation5 + $0x58] sm:$0xff]  }
  0xeb   : > { %1545 = vmatmul.mubr.bf16.gmra.mrb[60].mxu1 %v4803_v0  ;;  %3993 = vmatprep.subr.bf16.mxu1 %v4605_v10 }
  0xec   : > { %2475 = vmatprep.mubr.bf16.mxu1 %v4803_v0  ;;  %3994 = vmatpush3.bf16.msra.mxu1 %v4606_v11 }
  0xed   : > { %3995 = vmatprep.subr.bf16.mxu1 %v4607_v57  ;;  %v4635_v57 = vld [vmem:[#allocation5 + $0x150] sm:$0xff]  }
  0xf0   : > { %3996 = vmatpush3.bf16.msra.mxu1 %v4608_v13  ;;  %v4636_v13 = vld [vmem:[#allocation5 + $0x110] sm:$0xff]  }
  0xf1   : > { %4320 = vmatmul.mubr.msk.bf16.vlgmr.msra.gmra.mrb[64].mxu0 %vm5046_vm5, %v5098_v24  ;;  %3997 = vmatprep.subr.bf16.mxu1 %v4609_v16  ;;  %v4619_v24 = vld [vmem:[#allocation5 + $0xd8] sm:$0xff]  }
  0xf2   : > { %4323 = vmatprep.mubr.msk.bf16.mxu0 %vm5046_vm5, %v5118_v37  ;;  %4052 = vmatpush3.bf16.msra.mxu0 %v4612_v15  ;;  %v4626_v37 = vld [vmem:[#allocation5 + $0xa8] sm:$0xff]  }
  0xf3   : > { %4053 = vmatprep.subr.bf16.mxu0 %v4613_v18 }
  0xf4   : > { %3998 = vmatpush3.bf16.msra.mxu1 %v4610_v17 }
  0xf5   : > { %3999 = vmatprep.subr.bf16.mxu1 %v4615_v22 }
  0xf6   : > { %4054 = vmatpush3.bf16.msra.mxu0 %v4614_v19 }
  0xf7   : > { %4055 = vmatprep.subr.bf16.mxu0 %v4617_v20 }
  0xf8   : > { %4000 = vmatpush3.bf16.msra.mxu1 %v4616_v23 }
  0xf9   : > { %4324 = vmatmul.mubr.msk.bf16.gmra.mrb[68].mxu0 %vm5046_vm5, %v5139_v55  ;;  %4001 = vmatprep.subr.bf16.mxu1 %v4621_v26  ;;  %v4637_v26 = vld [vmem:[#allocation5 + $0x158] sm:$0xff]  }
  0xfa   : > { %4327 = vmatprep.mubr.msk.bf16.mxu0 %vm5046_vm5, %v5153_v63  ;;  %4056 = vmatpush3.bf16.msra.mxu0 %v4618_v21 }
  0xfb   : > { %4057 = vmatprep.subr.bf16.mxu0 %v4619_v24 }
  0xfc   : > { %4002 = vmatpush3.bf16.msra.mxu1 %v4622_v28  ;;  %v4639_v28 = vld [vmem:[#allocation5 + $0x1c0] sm:$0xff]  }
  0xfd   : > { %4115 = vmatprep.subr.bf16.mxu1 %v4627_v46 }
  0xfe   : > { %4058 = vmatpush3.bf16.msra.mxu0 %v4620_v25 }
  0xff   : > { %4059 = vmatprep.subr.bf16.mxu0 %v4623_v27  ;;  %2476 = vmatmul.mubr.bf16.vlgmr.msra.gmra.mrb[64].mxu1 %v4803_v0  ;;  %v4638_v27 = vld [vmem:[#allocation5 + $0x118] sm:$0xff]  }
 0x100   : > { %4116 = vmatpush3.bf16.msra.mxu1 %v4629_v47 }
 0x101   : > { %4328 = vmatmul.mubr.msk.bf16.gmra.mrb[72].mxu0 %vm5046_vm5, %v5164_v2  ;;  %4117 = vmatprep.subr.bf16.mxu1 %v4633_v58 }
 0x102   : > { %4331 = vmatprep.mubr.msk.bf16.mxu0 %vm5046_vm5, %v3579_v3  ;;  %4060 = vmatpush3.bf16.msra.mxu0 %v4624_v29 }
 0x103   : > { %4061 = vmatprep.subr.bf16.mxu0 %v4625_v33 }
 0x104   : > { %4118 = vmatpush3.bf16.msra.mxu1 %v4634_v42 }
 0x105   : > { %4119 = vmatprep.subr.bf16.mxu1 %v4635_v57 }
 0x106   : > { %4062 = vmatpush3.bf16.msra.mxu0 %v4626_v37 }
 0x107   : > { %4063 = vmatprep.subr.bf16.mxu0 %v4628_v44  ;;  %v4642_v44 = vld [vmem:[#allocation5 + $0x120] sm:$0xff]  }
 0x108   : > { %4120 = vmatpush3.bf16.msra.mxu1 %v4636_v13 }
 0x109   : > { %4332 = vmatmul.mubr.bf16.gmra.mrb[76].mxu0 %v4803_v0  ;;  %4121 = vmatprep.subr.bf16.mxu1 %v4637_v26 }
 0x10a   : > { %4064 = vmatpush3.bf16.msra.mxu0 %v4630_v49 }
 0x10b   : > { %4065 = vmatprep.subr.bf16.mxu0 %v4631_v60 }
 0x10c   : > { %4122 = vmatpush3.bf16.msra.mxu1 %v4638_v27 }
 0x10e   : > { %4066 = vmatpush3.bf16.msra.mxu0 %v4632_v1  ;;  %v4645_v1 = vld [vmem:[#allocation5 + $0x168] sm:$0xff]  }
 0x10f   : > { %4179 = vmatprep.subr.bf16.mxu0 %v4639_v28 }
 0x144   : > { %v3731_v30 = vpop.f32.mrb[0].mxu0 }
 0x145   : > { %v3732_v31 = vpop.f32.mrb[1].mxu0 }
 0x146   : > { %v3733_v35 = vadd.f32 %v3732_v31, %v3731_v30  ;;  %v3734_v36 = vpop.f32.mrb[2].mxu0  ;;  %v3795_v43 = vpop.f32.mrb[0].mxu1 }
 0x147   : > { %v3735_v39 = vpop.f32.mrb[3].mxu0  ;;  %v3796_v45 = vpop.f32.mrb[1].mxu1 }
 0x148   : > { %v1200_v40 = vadd.f32 %v3733_v35, %v5255_v34  ;;  %v3797_v50 = vadd.f32 %v3796_v45, %v3795_v43  ;;  %v3798_v52 = vpop.f32.mrb[2].mxu1  ;;  %v4641_v43 = vld [vmem:[#allocation5 + $0x160] sm:$0xff]  }
 0x149   : > { %v3799_v55 = vpop.f32.mrb[3].mxu1  ;;  %4123 = vmatprep.subr.bf16.mxu1 %v4641_v43  ;;  %v5282_v43 = vld [vmem:[#allocation5 + $0x200] sm:$0xff]  }
 0x14a   : > { %v5259_v56 = vadd.f32 %v3797_v50, %v1200_v40  ;;  %4124 = vmatpush3.bf16.msra.mxu1 %v4642_v44 }
 0x14b   : > { %4125 = vmatprep.subr.bf16.mxu1 %v4645_v1 }
 0x14c   : > { %v3737_v54 = vpop.f32.mrb[4].mxu0 }
 0x14d   : > { %v3738_v59 = vpop.f32.mrb[5].mxu0 }
 0x14e   : > { %v3739_v62 = vadd.f32 %v3738_v59, %v3737_v54  ;;  %v3740_v63 = vpop.f32.mrb[6].mxu0  ;;  %v3801_v5 = vpop.f32.mrb[4].mxu1 }
 0x14f   : > { %v3741_v2 = vpop.f32.mrb[7].mxu0  ;;  %v3802_v6 = vpop.f32.mrb[5].mxu1 }
 0x150   : > { %v1208_v4 = vadd.f32 %v3739_v62, %v5255_v34  ;;  %v3803_v48 = vadd.f32 %v3802_v6, %v3801_v5  ;;  %v3804_v53 = vpop.f32.mrb[6].mxu1  ;;  %v4646_v2 = vld [vmem:[#allocation5 + $0x128] sm:$0xff]  }
 0x151   : > { %v3805_v3 = vpop.f32.mrb[7].mxu1  ;;  %4126 = vmatpush3.bf16.msra.mxu1 %v4646_v2 }
 0x152   : > { %v5262_v32 = vadd.f32 %v3803_v48, %v1208_v4 }
 0x154   : > { %v3743_v61 = vpop.f32.mrb[8].mxu0 }
 0x155   : > { %v3744_v38 = vpop.f32.mrb[9].mxu0 }
 0x156   : > { %v3745_v51 = vadd.f32 %v3744_v38, %v3743_v61  ;;  %v3746_v7 = vpop.f32.mrb[10].mxu0  ;;  %v3807_v10 = vpop.f32.mrb[8].mxu1 }
 0x157   : > { %v3747_v8 = vpop.f32.mrb[11].mxu0  ;;  %v3808_v11 = vpop.f32.mrb[9].mxu1 }
 0x158   : > { %v1216_v9 = vadd.f32 %v3745_v51, %v5255_v34  ;;  %v3809_v14 = vadd.f32 %v3808_v11, %v3807_v10  ;;  %v3810_v15 = vpop.f32.mrb[10].mxu1  ;;  %v4649_v8 = vld [vmem:[#allocation5 + $0x170] sm:$0xff]  }
 0x159   : > { %v3811_v17 = vpop.f32.mrb[11].mxu1  ;;  %4127 = vmatprep.subr.bf16.mxu1 %v4649_v8 }
 0x15a   : > { %v5265_v18 = vadd.f32 %v3809_v14, %v1216_v9  ;;  %v4650_v9 = vld [vmem:[#allocation5 + $0x130] sm:$0xff]  }
 0x15b   : > { %4128 = vmatpush3.bf16.msra.mxu1 %v4650_v9 }
 0x15c   : > { %v3749_v16 = vpop.f32.mrb[12].mxu0 }
 0x15d   : > { %v3750_v19 = vpop.f32.mrb[13].mxu0 }
 0x15e   : > { %v3751_v20 = vadd.f32 %v3750_v19, %v3749_v16  ;;  %v3752_v21 = vpop.f32.mrb[14].mxu0  ;;  %v3813_v24 = vpop.f32.mrb[12].mxu1 }
 0x15f   : > { %v3753_v22 = vpop.f32.mrb[15].mxu0  ;;  %v3814_v25 = vpop.f32.mrb[13].mxu1 }
 0x160   : > { %v1224_v23 = vadd.f32 %v3751_v20, %v5255_v34  ;;  %v3815_v29 = vadd.f32 %v3814_v25, %v3813_v24  ;;  %v3816_v30 = vpop.f32.mrb[14].mxu1  ;;  %v4654_v24 = vld [vmem:[#allocation5 + $0x138] sm:$0xff]  }
 0x161   : > { %v3817_v33 = vpop.f32.mrb[15].mxu1 }
 0x162   : > { %v5268_v35 = vadd.f32 %v3815_v29, %v1224_v23  ;;  %v4653_v23 = vld [vmem:[#allocation5 + $0x178] sm:$0xff]  }
 0x163   : > { %4129 = vmatprep.subr.bf16.mxu1 %v4653_v23 }
 0x164   : > { %v3755_v31 = vpop.f32.mrb[16].mxu0  ;;  %4130 = vmatpush3.bf16.msra.mxu1 %v4654_v24 }
 0x165   : > { %v3756_v36 = vpop.f32.mrb[17].mxu0  ;;  %4335 = vmatprep.subr.bf16.mxu1 %v5282_v43 }
 0x166   : > { %v3757_v37 = vadd.f32 %v3756_v36, %v3755_v31  ;;  %v3758_v39 = vpop.f32.mrb[18].mxu0  ;;  %v3819_v46 = vpop.f32.mrb[16].mxu1 }
 0x167   : > { %v3759_v40 = vpop.f32.mrb[19].mxu0  ;;  %v3820_v47 = vpop.f32.mrb[17].mxu1 }
 0x168   : > { %v1232_v45 = vadd.f32 %v3757_v37, %v5255_v34  ;;  %v3821_v49 = vadd.f32 %v3820_v47, %v3819_v46  ;;  %v3822_v50 = vpop.f32.mrb[18].mxu1 }
 0x169   : > { %v3823_v54 = vpop.f32.mrb[19].mxu1 }
 0x16a   : > { %v5271_v55 = vadd.f32 %v3821_v49, %v1232_v45 }
 0x16c   : > { %v3761_v52 = vpop.f32.mrb[20].mxu0 }
 0x16d   : > { %v3762_v59 = vpop.f32.mrb[21].mxu0 }
 0x16e   : > { %v3763_v60 = vadd.f32 %v3762_v59, %v3761_v52  ;;  %v3764_v62 = vpop.f32.mrb[22].mxu0  ;;  %v3825_v5 = vpop.f32.mrb[20].mxu1 }
 0x16f   : > { %v3765_v63 = vpop.f32.mrb[23].mxu0  ;;  %v3826_v6 = vpop.f32.mrb[21].mxu1 }
 0x170   : > { %v1240_v4 = vadd.f32 %v3763_v60, %v5255_v34  ;;  %v3827_v58 = vadd.f32 %v3826_v6, %v3825_v5  ;;  %v3828_v42 = vpop.f32.mrb[22].mxu1 }
 0x171   : > { %v3829_v53 = vpop.f32.mrb[23].mxu1 }
 0x172   : > { %v5274_v61 = vadd.f32 %v3827_v58, %v1240_v4 }
 0x174   : > { %v3767_v48 = vpop.f32.mrb[24].mxu0 }
 0x175   : > { %v3768_v3 = vpop.f32.mrb[25].mxu0 }
 0x176   : > { %v3769_v38 = vadd.f32 %v3768_v3, %v3767_v48  ;;  %v3770_v51 = vpop.f32.mrb[26].mxu0  ;;  %v3831_v11 = vpop.f32.mrb[24].mxu1 }
 0x177   : > { %v3771_v7 = vpop.f32.mrb[27].mxu0  ;;  %v3832_v57 = vpop.f32.mrb[25].mxu1 }
 0x178   : > { %v1248_v10 = vadd.f32 %v3769_v38, %v5255_v34  ;;  %v3833_v13 = vadd.f32 %v3832_v57, %v3831_v11  ;;  %v3834_v14 = vpop.f32.mrb[26].mxu1 }
 0x179   : > { %v3835_v16 = vpop.f32.mrb[27].mxu1 }
 0x17a   : > { %v5277_v17 = vadd.f32 %v3833_v13, %v1248_v10 }
 0x17c   : > { %v3773_v15 = vpop.f32.mrb[28].mxu0 }
 0x17d   : > { %v3774_v19 = vpop.f32.mrb[29].mxu0 }
 0x17e   : > { %v3775_v20 = vadd.f32 %v3774_v19, %v3773_v15  ;;  %v3776_v21 = vpop.f32.mrb[30].mxu0  ;;  %v3837_v26 = vpop.f32.mrb[28].mxu1 }
 0x17f   : > { %v3777_v22 = vpop.f32.mrb[31].mxu0  ;;  %v3838_v27 = vpop.f32.mrb[29].mxu1 }
 0x180   : > { %v1256_v25 = vadd.f32 %v3775_v20, %v5255_v34  ;;  %v3839_v28 = vadd.f32 %v3838_v27, %v3837_v26  ;;  %v3840_v29 = vpop.f32.mrb[30].mxu1 }
 0x181   : > { %v3841_v31 = vpop.f32.mrb[31].mxu1 }
 0x182   : > { %v5280_v33 = vadd.f32 %v3839_v28, %v1256_v25 }
 0x184   : > { %v3859_v30 = vpop.f32.mrb[32].mxu0 }
 0x185   : > { %v3860_v36 = vpop.f32.mrb[33].mxu0 }
 0x186   : > { %v3861_v37 = vadd.f32 %v3860_v36, %v3859_v30  ;;  %v3862_v39 = vpop.f32.mrb[34].mxu0  ;;  %v3923_v45 = vpop.f32.mrb[32].mxu1 }
 0x187   : > { %v3863_v40 = vpop.f32.mrb[35].mxu0  ;;  %v3924_v34 = vpop.f32.mrb[33].mxu1 }
 0x188   : > { %v1394_v44 = vadd.f32 %v3861_v37, %v5259_v56  ;;  %v3925_v46 = vadd.f32 %v3924_v34, %v3923_v45  ;;  %v3926_v47 = vpop.f32.mrb[34].mxu1 }
 0x189   : > { %v3927_v50 = vpop.f32.mrb[35].mxu1 }
 0x18a   : > { %v5286_v54 = vadd.f32 %v3925_v46, %v1394_v44 }
 0x18c   : > { %v3865_v49 = vpop.f32.mrb[36].mxu0 }
 0x18d   : > { %v3866_v52 = vpop.f32.mrb[37].mxu0 }
 0x18e   : > { %v3867_v59 = vadd.f32 %v3866_v52, %v3865_v49  ;;  %v3868_v60 = vpop.f32.mrb[38].mxu0  ;;  %v3929_v1 = vpop.f32.mrb[36].mxu1 }
 0x18f   : > { %v3869_v62 = vpop.f32.mrb[39].mxu0  ;;  %v3930_v2 = vpop.f32.mrb[37].mxu1 }
 0x190   : > { %v1402_v63 = vadd.f32 %v3867_v59, %v5262_v32  ;;  %v3931_v4 = vadd.f32 %v3930_v2, %v3929_v1  ;;  %v3932_v56 = vpop.f32.mrb[38].mxu1 }
 0x191   : > { %v3933_v6 = vpop.f32.mrb[39].mxu1 }
 0x192   : > { %v5289_v42 = vadd.f32 %v3931_v4, %v1402_v63 }
 0x194   : > { %v3871_v5 = vpop.f32.mrb[40].mxu0 }
 0x195   : > { %v3872_v58 = vpop.f32.mrb[41].mxu0 }
 0x196   : > { %v3873_v48 = vadd.f32 %v3872_v58, %v3871_v5  ;;  %v3874_v53 = vpop.f32.mrb[42].mxu0  ;;  %v3935_v51 = vpop.f32.mrb[40].mxu1 }
 0x197   : > { %v3875_v3 = vpop.f32.mrb[43].mxu0  ;;  %v3936_v7 = vpop.f32.mrb[41].mxu1 }
 0x198   : > { %v1410_v38 = vadd.f32 %v3873_v48, %v5265_v18  ;;  %v3937_v8 = vadd.f32 %v3936_v7, %v3935_v51  ;;  %v3938_v9 = vpop.f32.mrb[42].mxu1 }
 0x199   : > { %v3939_v32 = vpop.f32.mrb[43].mxu1 }
 0x19a   : > { %v5292_v57 = vadd.f32 %v3937_v8, %v1410_v38 }
 0x19c   : > { %v3877_v10 = vpop.f32.mrb[44].mxu0 }
 0x19d   : > { %v3878_v11 = vpop.f32.mrb[45].mxu0 }
 0x19e   : > { %v3879_v13 = vadd.f32 %v3878_v11, %v3877_v10  ;;  %v3880_v14 = vpop.f32.mrb[46].mxu0  ;;  %v3941_v19 = vpop.f32.mrb[44].mxu1 }
 0x19f   : > { %v3881_v15 = vpop.f32.mrb[47].mxu0  ;;  %v3942_v20 = vpop.f32.mrb[45].mxu1 }
 0x1a0   : > { %v1418_v16 = vadd.f32 %v3879_v13, %v5268_v35  ;;  %v3943_v21 = vadd.f32 %v3942_v20, %v3941_v19  ;;  %v3944_v22 = vpop.f32.mrb[46].mxu1 }
 0x1a1   : > { %v3945_v18 = vpop.f32.mrb[47].mxu1 }
 0x1a2   : > { %v5295_v25 = vadd.f32 %v3943_v21, %v1418_v16  ;;  %v5312_v18 = vrot.slane %v4804_v41, 7 }
 0x1a4   : > { %v3883_v23 = vpop.f32.mrb[48].mxu0 }
 0x1a5   : > { %v3884_v24 = vpop.f32.mrb[49].mxu0 }
 0x1a6   : > { %v3885_v26 = vadd.f32 %v3884_v24, %v3883_v23  ;;  %v3886_v27 = vpop.f32.mrb[50].mxu0  ;;  %v3947_v30 = vpop.f32.mrb[48].mxu1 }
 0x1a7   : > { %v3887_v28 = vpop.f32.mrb[51].mxu0  ;;  %v3948_v31 = vpop.f32.mrb[49].mxu1 }
 0x1a8   : > { %v1426_v29 = vadd.f32 %v3885_v26, %v5271_v55  ;;  %v3949_v36 = vadd.f32 %v3948_v31, %v3947_v30  ;;  %v3950_v37 = vpop.f32.mrb[50].mxu1 }
 0x1a9   : > { %v3951_v35 = vpop.f32.mrb[51].mxu1 }
 0x1aa   : > { %v5298_v44 = vadd.f32 %v3949_v36, %v1426_v29 }
 0x1ac   : > { %v3889_v39 = vpop.f32.mrb[52].mxu0 }
 0x1ad   : > { %v3890_v40 = vpop.f32.mrb[53].mxu0 }
 0x1ae   : > { %v3891_v45 = vadd.f32 %v3890_v40, %v3889_v39  ;;  %v3892_v34 = vpop.f32.mrb[54].mxu0  ;;  %v3953_v49 = vpop.f32.mrb[52].mxu1 }
 0x1af   : > { %v3893_v46 = vpop.f32.mrb[55].mxu0  ;;  %v3954_v50 = vpop.f32.mrb[53].mxu1 }
 0x1b0   : > { %v1434_v47 = vadd.f32 %v3891_v45, %v5274_v61  ;;  %v3955_v52 = vadd.f32 %v3954_v50, %v3953_v49  ;;  %v3956_v59 = vpop.f32.mrb[54].mxu1 }
 0x1b1   : > { %v3957_v55 = vpop.f32.mrb[55].mxu1 }
 0x1b2   : > { %v5301_v63 = vadd.f32 %v3955_v52, %v1434_v47  ;;  %v4640_v47 = vld [vmem:[#allocation5 + $0x180] sm:$0xff]  }
 0x1b4   : > { %v3895_v60 = vpop.f32.mrb[56].mxu0 }
 0x1b5   : > { %v3896_v62 = vpop.f32.mrb[57].mxu0 }
 0x1b6   : > { %v3897_v1 = vadd.f32 %v3896_v62, %v3895_v60  ;;  %v3898_v2 = vpop.f32.mrb[58].mxu0  ;;  %v3959_v5 = vpop.f32.mrb[56].mxu1  ;;  %v4643_v60 = vld [vmem:[#allocation5 + $0x1c8] sm:$0xff]  }
 0x1b7   : > { %v3899_v4 = vpop.f32.mrb[59].mxu0  ;;  %v3960_v6 = vpop.f32.mrb[57].mxu1 }
 0x1b8   : > { %v1442_v56 = vadd.f32 %v3897_v1, %v5277_v17  ;;  %v3961_v58 = vadd.f32 %v3960_v6, %v3959_v5  ;;  %v3962_v48 = vpop.f32.mrb[58].mxu1  ;;  %v4647_v5 = vld [vmem:[#allocation5 + $0x1d0] sm:$0xff]  }
 0x1b9   : > { %v3963_v61 = vpop.f32.mrb[59].mxu1 }
 0x1ba   : > { %v5304_v38 = vadd.f32 %v3961_v58, %v1442_v56 }
 0x1bc   : > { %v3901_v53 = vpop.f32.mrb[60].mxu0 }
 0x1bd   : > { %v3902_v3 = vpop.f32.mrb[61].mxu0 }
 0x1be   : > { %v3903_v51 = vadd.f32 %v3902_v3, %v3901_v53  ;;  %v3904_v7 = vpop.f32.mrb[62].mxu0  ;;  %v3965_v10 = vpop.f32.mrb[60].mxu1 }
 0x1bf   : > { %v3905_v8 = vpop.f32.mrb[63].mxu0  ;;  %v3966_v32 = vpop.f32.mrb[61].mxu1 }
 0x1c0   : > { %v1450_v9 = vadd.f32 %v3903_v51, %v5280_v33  ;;  %v3967_v11 = vadd.f32 %v3966_v32, %v3965_v10  ;;  %v3968_v13 = vpop.f32.mrb[62].mxu1  ;;  %v5315_v33 = vrot.slane %v4804_v41, 1  ;;  %v4648_v10 = vld [vmem:[#allocation5 + $0x190] sm:$0xff]  }
 0x1c1   : > { %v3969_v17 = vpop.f32.mrb[63].mxu1 }
 0x1c2   : > { %v5308_v19 = vadd.f32 %v3967_v11, %v1450_v9  ;;  %v4651_v17 = vld [vmem:[#allocation5 + $0x1d8] sm:$0xff]  }
 0x1c4   : > { %v4321_v14 = vpop.f32.mrb[64].mxu0 }
 0x1c5   : > { %v1596_v15 = vadd.f32 %v4321_v14, %v5289_v42  ;;  %v1587_v16 = vpop.f32.mrb[65].mxu0 }
 0x1c6   : > { %v1588_v20 = vadd.f32 %v1587_v16, %v5286_v54  ;;  %v4322_v21 = vpop.f32.mrb[66].mxu0 }
 0x1c7   : > { %v1652_v22 = vmax.f32 %v1596_v15, 0.0  ;;  %v1590_v23 = vpop.f32.mrb[67].mxu0 }
 0x1c8   : > { %v1650_v24 = vmax.f32 %v1588_v20, 0.0 }
 0x1c9   : > { %v1684_v26 = vrot.slane %v1652_v22, 7  ;;  %v1748_v27 = vrot.slane %v1652_v22, 1  ;;  %v5349_v52 = vpack.c.bf16 %v4804_v41, %v1652_v22  ;;  %v4652_v22 = vld [vmem:[#allocation5 + $0x198] sm:$0xff]  }
 0x1ca   : > { %v1682_v28 = vrot.slane %v1650_v24, 7  ;;  %v1746_v29 = vrot.slane %v1650_v24, 1  ;;  %v5318_v42 = vpack.c.bf16 %v4804_v41, %v1650_v24  ;;  %v4655_v24 = vld [vmem:[#allocation5 + $0x1e0] sm:$0xff]  }
 0x1cb   : > { %v1710_v54 = vsel %vm436_vm0, %v1684_v26, %v5312_v18  ;;  %v1775_v30 = vsel %vm485_vm3, %v5315_v33, %v1748_v27  ;;  %v1711_v39 = vsel %vm436_vm0, %v5312_v18, %v1684_v26  ;;  %v1774_v3 = vsel %vm485_vm3, %v1748_v27, %v5315_v33 }
 0x1cc   : > { %v4325_v31 = vpop.f32.mrb[68].mxu0  ;;  %2483 = vmatprep.mubr.bf16.mxu1 %v5318_v42  ;;  %v1712_v36 = vsel %vm436_vm0, %v1682_v28, %v5312_v18  ;;  %v1713_v37 = vsel %vm436_vm0, %v5312_v18, %v1682_v28  ;;  %v1776_v35 = vsel %vm485_vm3, %v1746_v29, %v5315_v33  ;;  %v5345_v49 = vsel %vm485_vm3, %v5315_v33, %v1746_v29 }
 0x1cd   : > { %v1612_v40 = vadd.f32 %v4325_v31, %v5295_v25  ;;  %v1603_v45 = vpop.f32.mrb[69].mxu0  ;;  %v1809_v34 = vpack.c.bf16 %v1712_v36, %v1713_v37  ;;  %v5340_v46 = vpack.c.bf16 %v1775_v30, %v1776_v35  ;;  %v5351_v25 = vpack.c.bf16 %v1710_v54, %v1711_v39  ;;  %v4656_v35 = vld [vmem:[#allocation5 + $0x1a0] sm:$0xff]  }
 0x1ce   : > { %v1604_v50 = vadd.f32 %v1603_v45, %v5292_v57  ;;  %v4326_v59 = vpop.f32.mrb[70].mxu0  ;;  %v4644_v57 = vld [vmem:[#allocation5 + $0x188] sm:$0xff]  }
 0x1cf   : > { %v1656_v55 = vmax.f32 %v1612_v40, 0.0  ;;  %2484 = vmatmul.mubr.bf16.gmra.mrb[68].mxu1 %v1809_v34  ;;  %2572 = vmatprep.mubr.bf16.mxu0 %v1809_v34  ;;  %v1606_v62 = vpop.f32.mrb[71].mxu0 }
 0x1d0   : > { %v1654_v1 = vmax.f32 %v1604_v50, 0.0  ;;  %2491 = vmatprep.mubr.bf16.mxu1 %v5349_v52  ;;  %2573 = vmatmul.mubr.bf16.vlgmr.msra.gmra.mrb[80].mxu0 %v4803_v0  ;;  %v4657_v50 = vld [vmem:[#allocation5 + $0x1e8] sm:$0xff]  }
 0x1d1   : > { %v1752_v2 = vrot.slane %v1656_v55, 1  ;;  %2580 = vmatprep.mubr.bf16.mxu0 %v5351_v25  ;;  %4180 = vmatpush3.bf16.msra.mxu0 %v4640_v47  ;;  %v1688_v20 = vrot.slane %v1656_v55, 7  ;;  %v5415_v45 = vpack.c.bf16 %v4804_v41, %v1656_v55  ;;  %v4658_v55 = vld [vmem:[#allocation5 + $0x1a8] sm:$0xff]  }
 0x1d2   : > { %v1686_v4 = vrot.slane %v1654_v1, 7  ;;  %v1750_v56 = vrot.slane %v1654_v1, 1  ;;  %4181 = vmatprep.subr.bf16.mxu0 %v4643_v60  ;;  %v5379_v11 = vpack.c.bf16 %v4804_v41, %v1654_v1 }
 0x1d3   : > { %v1771_v6 = vsel %vm485_vm3, %v5315_v33, %v1752_v2  ;;  %v1706_v28 = vsel %vm436_vm0, %v1688_v20, %v5312_v18  ;;  %v1707_v29 = vsel %vm436_vm0, %v5312_v18, %v1688_v20  ;;  %v1770_v30 = vsel %vm485_vm3, %v1752_v2, %v5315_v33 }
 0x1d4   : > { %v4329_v58 = vpop.f32.mrb[72].mxu0  ;;  %v1708_v48 = vsel %vm436_vm0, %v1686_v4, %v5312_v18  ;;  %v1709_v53 = vsel %vm436_vm0, %v5312_v18, %v1686_v4  ;;  %v1773_v61 = vsel %vm485_vm3, %v5315_v33, %v1750_v56  ;;  %v1772_v9 = vsel %vm485_vm3, %v1750_v56, %v5315_v33 }
 0x1d5   : > { %v1628_v51 = vadd.f32 %v4329_v58, %v5301_v63  ;;  %v1619_v7 = vpop.f32.mrb[73].mxu0  ;;  %v5372_v8 = vpack.c.bf16 %v1773_v61, %v1774_v3  ;;  %4182 = vmatpush3.bf16.msra.mxu0 %v4644_v57  ;;  %v5381_v14 = vpack.c.bf16 %v1771_v6, %v1772_v9  ;;  %v5386_v15 = vpack.c.bf16 %v1708_v48, %v1709_v53  ;;  %v4660_v57 = vld [vmem:[#allocation5 + $0x1f0] sm:$0xff]  }
 0x1d6   : > { %v1620_v32 = vadd.f32 %v1619_v7, %v5298_v44  ;;  %v4330_v13 = vpop.f32.mrb[74].mxu0  ;;  %4183 = vmatprep.subr.bf16.mxu0 %v4647_v5  ;;  %v5422_v59 = vpack.c.bf16 %v1706_v28, %v1707_v29  ;;  %v4661_v3 = vld [vmem:[#allocation5 + $0x1b0] sm:$0xff]   ;;  %v4664_v29 = vld [vmem:[#allocation5 + $0x208] sm:$0xff]  }
 0x1d7   : > { %v5383_v63 = vmax.f32 %v1628_v51, 0.0  ;;  %2492 = vmatmul.mubr.bf16.gmra.mrb[72].mxu1 %v5351_v25  ;;  %v1622_v16 = vpop.f32.mrb[75].mxu0 }
 0x1d8   : > { %v1658_v21 = vmax.f32 %v1620_v32, 0.0  ;;  %2499 = vmatprep.mubr.bf16.mxu1 %v5379_v11  ;;  %2581 = vmatmul.mubr.bf16.gmra.mrb[84].mxu0 %v5340_v46 }
 0x1d9   : > { %v1756_v44 = vrot.slane %v5383_v63, 1  ;;  %2588 = vmatprep.mubr.bf16.mxu0 %v5386_v15  ;;  %4184 = vmatpush3.bf16.msra.mxu0 %v4648_v10  ;;  %v4662_v10 = vld [vmem:[#allocation5 + $0x1f8] sm:$0xff]   ;;  %v1692_v13 = vrot.slane %v5383_v63, 7  ;;  %v5474_v16 = vpack.c.bf16 %v4804_v41, %v5383_v63 }
 0x1da   : > { %v1754_v23 = vrot.slane %v1658_v21, 1  ;;  %4185 = vmatprep.subr.bf16.mxu0 %v4651_v17  ;;  %v1690_v62 = vrot.slane %v1658_v21, 7  ;;  %v5455_v7 = vpack.c.bf16 %v4804_v41, %v1658_v21 }
 0x1db   : > { %v1767_v26 = vsel %vm485_vm3, %v5315_v33, %v1756_v44  ;;  %v1766_v48 = vsel %vm485_vm3, %v1756_v44, %v5315_v33  ;;  %v1703_v17 = vsel %vm436_vm0, %v5312_v18, %v1692_v13 }
 0x1dc   : > { %v4333_v27 = vpop.f32.mrb[76].mxu0  ;;  %v1769_v54 = vsel %vm485_vm3, %v5315_v33, %v1754_v23  ;;  %v1768_v39 = vsel %vm485_vm3, %v1754_v23, %v5315_v33  ;;  %v1704_v5 = vsel %vm436_vm0, %v1690_v62, %v5312_v18  ;;  %v1705_v6 = vsel %vm436_vm0, %v5312_v18, %v1690_v62  ;;  %v2993_v62 = vld [vmem:[%s5878_s5 + $0x58] sm:$0xff] }
 0x1dd   : > { %v1644_v31 = vadd.f32 %v4333_v27, %v5308_v19  ;;  %v1635_v36 = vpop.f32.mrb[77].mxu0  ;;  %v5408_v37 = vpack.c.bf16 %v1769_v54, %v1770_v30  ;;  %4186 = vmatpush3.bf16.msra.mxu0 %v4652_v22  ;;  %v5417_v47 = vpack.c.bf16 %v1767_v26, %v1768_v39  ;;  %v5460_v32 = vpack.c.bf16 %v1704_v5, %v1705_v6  ;;  %v4666_v54 = vld [vmem:[#allocation5 + $0x218] sm:$0xff]  }
 0x1de   : > { %v1636_v40 = vadd.f32 %v1635_v36, %v5304_v38  ;;  %v4334_v34 = vpop.f32.mrb[78].mxu0  ;;  %4187 = vmatprep.subr.bf16.mxu0 %v4655_v24  ;;  %v4670_v39 = vld [vmem:[#allocation5 + $0x238] sm:$0xff]  }
 0x1df   : > { %v5419_v19 = vmax.f32 %v1644_v31, 0.0  ;;  %2500 = vmatmul.mubr.bf16.gmra.mrb[76].mxu1 %v5386_v15  ;;  %v1638_v60 = vpop.f32.mrb[79].mxu0  ;;  %v2989_v34 = vld [vmem:[%s5878_s5 + $0x38] sm:$0xff] }
 0x1e0   : > { %v1662_v1 = vmax.f32 %v1636_v40, 0.0  ;;  %2507 = vmatprep.mubr.bf16.mxu1 %v5415_v45  ;;  %2589 = vmatmul.mubr.bf16.gmra.mrb[88].mxu0 %v5372_v8  ;;  %v2991_v60 = vld [vmem:[%s5878_s5 + $0x48] sm:$0xff] }
 0x1e1   : > { %v1760_v38 = vrot.slane %v5419_v19, 1  ;;  %2596 = vmatprep.mubr.bf16.mxu0 %v5422_v59  ;;  %4188 = vmatpush3.bf16.msra.mxu0 %v4656_v35  ;;  %v1696_v24 = vrot.slane %v5419_v19, 7  ;;  %v2984_v35 = vld [vmem:[%s5878_s5 + $0x10] sm:$0xff] }
 0x1e2   : > { %v1758_v2 = vrot.slane %v1662_v1, 1  ;;  %4189 = vmatprep.subr.bf16.mxu0 %v4657_v50  ;;  %v1694_v21 = vrot.slane %v1662_v1, 7  ;;  %v5489_v22 = vpack.c.bf16 %v4804_v41, %v1662_v1  ;;  %v2986_v50 = vld [vmem:[%s5878_s5 + $0x20] sm:$0xff]  ;;  %v4394_v1 = vpack.c.bf16 %v2993_v62, %v2991_v60 }
 0x1e3   : > { %v1763_v4 = vsel %vm485_vm3, %v5315_v33, %v1760_v38  ;;  %v1762_v56 = vsel %vm485_vm3, %v1760_v38, %v5315_v33  ;;  %v1698_v26 = vsel %vm436_vm0, %v1696_v24, %v5312_v18  ;;  %v1699_v27 = vsel %vm436_vm0, %v5312_v18, %v1696_v24  ;;  %v2990_v38 = vld [vmem:[%s5878_s5 + $0x40] sm:$0xff] }
 0x1e4   : > { %v1765_v58 = vsel %vm485_vm3, %v5315_v33, %v1758_v2  ;;  %v1764_v61 = vsel %vm485_vm3, %v1758_v2, %v5315_v33  ;;  %v5452_v51 = vpack.c.bf16 %v5345_v49, %v1762_v56  ;;  %v4663_v33 = vld [vmem:[#allocation5 + $0x1b8] sm:$0xff]   ;;  %v1702_v49 = vsel %vm436_vm0, %v1692_v13, %v5312_v18 }
 0x1e5   : > { %v5446_v53 = vpack.c.bf16 %v1765_v58, %v1766_v48  ;;  %4190 = vmatpush3.bf16.msra.mxu0 %v4658_v55  ;;  %v5457_v9 = vpack.c.bf16 %v1763_v4, %v1764_v61  ;;  %v5477_v20 = vpack.c.bf16 %v1702_v49, %v1703_v17  ;;  %v1700_v44 = vsel %vm436_vm0, %v1694_v21, %v5312_v18  ;;  %v2992_v55 = vld [vmem:[%s5878_s5 + $0x50] sm:$0xff] }
 0x1e6   : > { %4191 = vmatprep.subr.bf16.mxu0 %v4660_v57  ;;  %v1701_v63 = vsel %vm436_vm0, %v5312_v18, %v1694_v21  ;;  %v1851_v28 = vpack.c.bf16 %v1698_v26, %v1699_v27  ;;  %v4665_v18 = vld [vmem:[#allocation5 + $0x210] sm:$0xff]   ;;  %v4396_v2 = vpack.c.bf16 %v2992_v55, %v2990_v38  ;;  %v5589_v57 = vld [vmem:[%s5877_s4] ss:$0 sm:$0xff] }
 0x1e7   : > { %2508 = vmatmul.mubr.bf16.gmra.mrb[80].mxu1 %v5422_v59  ;;  %v5492_v23 = vpack.c.bf16 %v1700_v44, %v1701_v63  ;;  %v2996_v49 = vld [vmem:[%s5878_s5 + $0x70] sm:$0xff] }
 0x1e8   : > { %2515 = vmatprep.mubr.bf16.mxu1 %v5455_v7  ;;  %2597 = vmatmul.mubr.bf16.gmra.mrb[92].mxu0 %v5381_v14 }
 0x1e9   : > { %2604 = vmatprep.mubr.bf16.mxu0 %v5460_v32  ;;  %4192 = vmatpush3.bf16.msra.mxu0 %v4661_v3 }
 0x1ea   : > { %4193 = vmatprep.subr.bf16.mxu0 %v4662_v10 }
 0x1ed   : > { %4194 = vmatpush3.bf16.msra.mxu0 %v4663_v33  ;;  %v2994_v33 = vld [vmem:[%s5878_s5 + $0x60] sm:$0xff] }
 0x1ee   : > { %v4400_v17 = vpack.c.bf16 %v2996_v49, %v2994_v33 }
 0x1ef   : > { %2516 = vmatmul.mubr.bf16.gmra.mrb[84].mxu1 %v5460_v32 }
 0x1f0   : > { %2523 = vmatprep.mubr.bf16.mxu1 %v5474_v16  ;;  %2605 = vmatmul.mubr.bf16.gmra.mrb[96].mxu0 %v5408_v37 }
 0x1f1   : > { %2612 = vmatprep.mubr.bf16.mxu0 %v5477_v20 }
 0x1f7   : > { %2524 = vmatmul.mubr.bf16.gmra.mrb[88].mxu1 %v5477_v20 }
 0x1f8   : > { %2531 = vmatprep.mubr.bf16.mxu1 %v5489_v22  ;;  %2613 = vmatmul.mubr.bf16.gmra.mrb[100].mxu0 %v5417_v47 }
 0x1f9   : > { %2620 = vmatprep.mubr.bf16.mxu0 %v5492_v23 }
 0x1ff   : > { %2532 = vmatmul.mubr.bf16.gmra.mrb[92].mxu1 %v5492_v23 }
 0x200   : > { %2621 = vmatmul.mubr.bf16.gmra.mrb[104].mxu0 %v5446_v53  ;;  %2669 = vmatprep.mubr.bf16.mxu1 %v5340_v46  ;;  %v4669_v46 = vld [vmem:[#allocation5 + $0x230] sm:$0xff]  }
 0x201   : > { %2628 = vmatprep.mubr.bf16.mxu0 %v1851_v28 }
 0x207   : > { %2670 = vmatmul.mubr.bf16.vlgmr.msra.gmra.mrb[96].mxu1 %v5318_v42  ;;  %v4667_v42 = vld [vmem:[#allocation5 + $0x220] sm:$0xff]  }
 0x208   : > { %2629 = vmatmul.mubr.bf16.gmra.mrb[108].mxu0 %v5457_v9  ;;  %2677 = vmatprep.mubr.bf16.mxu1 %v5372_v8 }
 0x209   : > { %4336 = vmatpush3.bf16.msra.mxu1 %v5282_v43  ;;  %2766 = vmatprep.mubr.bf16.mxu0 %v5349_v52  ;;  %v4668_v43 = vld [vmem:[#allocation5 + $0x228] sm:$0xff]  }
 0x20a   : > { %4337 = vmatprep.subr.bf16.mxu1 %v4664_v29 }
 0x20d   : > { %4338 = vmatpush3.bf16.msra.mxu1 %v4664_v29  ;;  %v3001_v29 = vld [vmem:[%s5878_s5 + $0x98] sm:$0xff] }
 0x20e   : > { %4339 = vmatprep.subr.bf16.mxu1 %v4665_v18 }
 0x20f   : > { %2678 = vmatmul.mubr.bf16.gmra.mrb[100].mxu1 %v5349_v52  ;;  %v4003_v52 = vpop.f32.mrb[64].mxu1 }
 0x210   : > { %2685 = vmatprep.mubr.bf16.mxu1 %v5381_v14  ;;  %2767 = vmatmul.mubr.bf16.vlgmr.msra.gmra.mrb[112].mxu0 %v5351_v25  ;;  %v4004_v25 = vpop.f32.mrb[65].mxu1 }
 0x211   : > { %2774 = vmatprep.mubr.bf16.mxu0 %v5379_v11  ;;  %4340 = vmatpush3.bf16.msra.mxu1 %v4665_v18  ;;  %v5520_v30 = vadd.f32 %v4004_v25, %v4003_v52  ;;  %v4006_v31 = vpop.f32.mrb[66].mxu1 }
 0x212   : > { %4341 = vmatprep.subr.bf16.mxu1 %v4666_v54  ;;  %v4007_v36 = vpop.f32.mrb[67].mxu1 }
 0x215   : > { %4342 = vmatpush3.bf16.msra.mxu1 %v4666_v54 }
 0x216   : > { %4343 = vmatprep.subr.bf16.mxu1 %v4667_v42 }
 0x217   : > { %2686 = vmatmul.mubr.bf16.gmra.mrb[104].mxu1 %v5379_v11  ;;  %v1852_v11 = vpack.c.bf16 %v4804_v41, %v5419_v19  ;;  %v2988_v19 = vld [vmem:[%s5878_s5 + $0x30] sm:$0xff] }
 0x218   : > { %2693 = vmatprep.mubr.bf16.mxu1 %v5408_v37  ;;  %2775 = vmatmul.mubr.bf16.gmra.mrb[116].mxu0 %v5386_v15 }
 0x219   : > { %2782 = vmatprep.mubr.bf16.mxu0 %v5415_v45  ;;  %4344 = vmatpush3.bf16.msra.mxu1 %v4667_v42 }
 0x21a   : > { %4345 = vmatprep.subr.bf16.mxu1 %v4668_v43 }
 0x21d   : > { %4346 = vmatpush3.bf16.msra.mxu1 %v4668_v43  ;;  %v2998_v43 = vld [vmem:[%s5878_s5 + $0x80] sm:$0xff] }
 0x21e   : > { %4347 = vmatprep.subr.bf16.mxu1 %v4669_v46 }
 0x21f   : > { %2694 = vmatmul.mubr.bf16.gmra.mrb[108].mxu1 %v5415_v45  ;;  %v2987_v45 = vld [vmem:[%s5878_s5 + $0x28] sm:$0xff] }
 0x220   : > { %2701 = vmatprep.mubr.bf16.mxu1 %v5417_v47  ;;  %2783 = vmatmul.mubr.bf16.gmra.mrb[120].mxu0 %v5422_v59  ;;  %v4392_v59 = vpack.c.bf16 %v2988_v19, %v2986_v50 }
 0x221   : > { %2790 = vmatprep.mubr.bf16.mxu0 %v5455_v7  ;;  %4348 = vmatpush3.bf16.msra.mxu1 %v4669_v46  ;;  %v3000_v46 = vld [vmem:[%s5878_s5 + $0x90] sm:$0xff] }
 0x222   : > { %4349 = vmatprep.subr.bf16.mxu1 %v4670_v39  ;;  %v4404_v52 = vpack.c.bf16 %v3000_v46, %v2998_v43  ;;  %v3115_v43 = vld [vmem:[%s5880_s7 + $0x80] sm:$0xff]  ;;  %v3116_v46 = vld [vmem:[%s5880_s7 + $0x88] sm:$0xff] }
 0x225   : > { %4350 = vmatpush3.bf16.msra.mxu1 %v4670_v39 }
 0x227   : > { %2702 = vmatmul.mubr.bf16.gmra.mrb[112].mxu1 %v5455_v7  ;;  %v2995_v7 = vld [vmem:[%s5878_s5 + $0x68] sm:$0xff] }
 0x228   : > { %2709 = vmatprep.mubr.bf16.mxu1 %v5446_v53  ;;  %2791 = vmatmul.mubr.bf16.gmra.mrb[124].mxu0 %v5460_v32 }
 0x229   : > { %2798 = vmatprep.mubr.bf16.mxu0 %v5474_v16 }
 0x22f   : > { %2710 = vmatmul.mubr.bf16.gmra.mrb[116].mxu1 %v5474_v16 }
 0x230   : > { %2717 = vmatprep.mubr.bf16.mxu1 %v5457_v9  ;;  %2799 = vmatmul.mubr.bf16.gmra.mrb[128].mxu0 %v5477_v20 }
 0x231   : > { %2806 = vmatprep.mubr.bf16.mxu0 %v5489_v22 }
 0x237   : > { %2718 = vmatmul.mubr.bf16.gmra.mrb[120].mxu1 %v5489_v22 }
 0x238   : > { %2725 = vmatprep.mubr.bf16.mxu1 %v5452_v51  ;;  %2807 = vmatmul.mubr.bf16.gmra.mrb[132].mxu0 %v5492_v23 }
 0x239   : > { %2814 = vmatprep.mubr.bf16.mxu0 %v1852_v11 }
 0x23f   : > { %2726 = vmatmul.mubr.bf16.gmra.mrb[124].mxu1 %v1852_v11 }
 0x240   : > { %2815 = vmatmul.mubr.bf16.gmra.mrb[136].mxu0 %v1851_v28  ;;  %4351 = vmatprep.mubr.bf16.mxu1 %v5372_v8  ;;  %v2983_v8 = vld [vmem:[%s5878_s5 + $0x8] sm:$0xff] }
 0x241   : > { %2822 = vmatprep.mubr.bf16.mxu0 %v4803_v0  ;;  %v2999_v28 = vld [vmem:[%s5878_s5 + $0x88] sm:$0xff] }
 0x242   : > { %v4402_v54 = vpack.c.bf16 %v3001_v29, %v2999_v28  ;;  %v3010_v28 = vld [vmem:[%s5878_s5 + $0xe0] sm:$0xff]  ;;  %v3012_v29 = vld [vmem:[%s5878_s5 + $0xf0] sm:$0xff] }
 0x247   : > { %4352 = vmatmul.mubr.bf16.vlgmr.msra.gmra.mrb[128].mxu1 %v5381_v14  ;;  %v2985_v14 = vld [vmem:[%s5878_s5 + $0x18] sm:$0xff] }
 0x248   : > { %2823 = vmatmul.mubr.bf16.gmra.mrb[140].mxu0 %v4803_v0  ;;  %4355 = vmatprep.mubr.bf16.mxu1 %v5408_v37  ;;  %v4386_v15 = vpack.c.bf16 %v2985_v14, %v2983_v8  ;;  %v2982_v37 = vld [vmem:[%s5878_s5] sm:$0xff] }
 0x249   : > { %3090 = vmatprep.mubr.f32.mxu0 %v4804_v41  ;;  %v4388_v40 = vpack.c.bf16 %v2984_v35, %v2982_v37  ;;  %v3003_v35 = vld [vmem:[%s5878_s5 + $0xa8] sm:$0xff] }
 0x24a   : > { %4387 = vmatprep.subr.bf16.mxu0 %v4386_v15 }
 0x24b   : > { %4389 = vmatpush1.bf16.msra.mxu0 %v4388_v40  ;;  %v3005_v40 = vld [vmem:[%s5878_s5 + $0xb8] sm:$0xff] }
 0x24f   : > { %4356 = vmatmul.mubr.bf16.gmra.mrb[132].mxu1 %v5417_v47  ;;  %v4390_v47 = vpack.c.bf16 %v2989_v34, %v2987_v45  ;;  %v4406_v34 = vpack.c.bf16 %v3005_v40, %v3003_v35  ;;  %v3101_v40 = vld [vmem:[%s5880_s7 + $0x10] sm:$0xff] }
 0x250   : > { %4359 = vmatprep.mubr.bf16.mxu1 %v5446_v53  ;;  %v2478_v53 = vadd.f32 %v5520_v30, %v5589_v57 }
 0x251   : > { %4391 = vmatprep.subr.bf16.mxu0 %v4390_v47 }
 0x252   : > { %4393 = vmatpush1.bf16.msra.mxu0 %v4392_v59 }
 0x253   : > { %4395 = vmatprep.subr.bf16.mxu0 %v4394_v1 }
 0x256   : > { %4397 = vmatpush1.bf16.msra.mxu0 %v4396_v2 }
 0x257   : > { %4360 = vmatmul.mubr.bf16.gmra.mrb[136].mxu1 %v5457_v9  ;;  %v2997_v9 = vld [vmem:[%s5878_s5 + $0x78] sm:$0xff] }
 0x258   : > { %4363 = vmatprep.mubr.bf16.mxu1 %v5452_v51  ;;  %v4398_v32 = vpack.c.bf16 %v2997_v9, %v2995_v7 }
 0x25a   : > { %4399 = vmatprep.subr.bf16.mxu0 %v4398_v32  ;;  %v3008_v32 = vld [vmem:[%s5878_s5 + $0xd0] sm:$0xff] }
 0x25b   : > { %4401 = vmatpush1.bf16.msra.mxu0 %v4400_v17 }
 0x25c   : > { %4403 = vmatprep.subr.bf16.mxu0 %v4402_v54 }
 0x25f   : > { %4364 = vmatmul.mubr.bf16.gmra.mrb[140].mxu1 %v4803_v0  ;;  %4405 = vmatpush1.bf16.msra.mxu0 %v4404_v52  ;;  %v3099_v52 = vld [vmem:[%s5880_s7] sm:$0xff] }
 0x260   : > { %4407 = vmatprep.subr.bf16.mxu0 %v4406_v34  ;;  %v3119_v34 = vld [vmem:[%s5880_s7 + $0xa0] sm:$0xff] }
 0x2a2   : > { %v4009_v4 = vpop.f32.mrb[68].mxu1 }
 0x2a3   : > { %v4010_v56 = vpop.f32.mrb[69].mxu1  ;;  %v4067_v5 = vpop.f32.mrb[80].mxu0 }
 0x2a4   : > { %v4011_v6 = vadd.f32 %v4010_v56, %v4009_v4  ;;  %v4012_v58 = vpop.f32.mrb[70].mxu1  ;;  %v4068_v48 = vpop.f32.mrb[81].mxu0 }
 0x2a5   : > { %v4069_v61 = vadd.f32 %v4068_v48, %v4067_v5  ;;  %v4013_v3 = vpop.f32.mrb[71].mxu1  ;;  %v4070_v51 = vpop.f32.mrb[82].mxu0  ;;  %v3004_v58 = vld [vmem:[%s5878_s5 + $0xb0] sm:$0xff] }
 0x2a6   : > { %v4071_v10 = vpop.f32.mrb[83].mxu0  ;;  %v2486_v23 = vadd.f32 %v4011_v6, %v5589_v57  ;;  %v3002_v6 = vld [vmem:[%s5878_s5 + $0xa0] sm:$0xff]  ;;  %v3009_v3 = vld [vmem:[%s5878_s5 + $0xd8] sm:$0xff] }
 0x2a7   : > { %v5599_v13 = vadd.f32 %v4069_v61, %v2478_v53  ;;  %v4408_v48 = vpack.c.bf16 %v3004_v58, %v3002_v6  ;;  %v3007_v61 = vld [vmem:[%s5878_s5 + $0xc8] sm:$0xff]  ;;  %v3006_v10 = vld [vmem:[%s5878_s5 + $0xc0] sm:$0xff]  ;;  %v3121_v6 = vld [vmem:[%s5880_s7 + $0xb0] sm:$0xff] }
 0x2a8   : > { %v4410_v9 = vpack.c.bf16 %v3009_v3, %v3007_v61  ;;  %v3122_v58 = vld [vmem:[%s5880_s7 + $0xb8] sm:$0xff] }
 0x2a9   : > { %4409 = vmatpush1.bf16.msra.mxu0 %v4408_v48 }
 0x2aa   : > { %v4015_v16 = vpop.f32.mrb[72].mxu1  ;;  %4411 = vmatprep.subr.bf16.mxu0 %v4410_v9  ;;  %v3106_v9 = vld [vmem:[%s5880_s7 + $0x38] sm:$0xff] }
 0x2ab   : > { %v4016_v20 = vpop.f32.mrb[73].mxu1  ;;  %v4073_v21 = vpop.f32.mrb[84].mxu0 }
 0x2ac   : > { %v4017_v44 = vadd.f32 %v4016_v20, %v4015_v16  ;;  %v4018_v63 = vpop.f32.mrb[74].mxu1  ;;  %v4074_v22 = vpop.f32.mrb[85].mxu0  ;;  %v4412_v16 = vpack.c.bf16 %v3008_v32, %v3006_v10 }
 0x2ad   : > { %v4075_v24 = vadd.f32 %v4074_v22, %v4073_v21  ;;  %v4019_v26 = vpop.f32.mrb[75].mxu1  ;;  %v4076_v27 = vpop.f32.mrb[86].mxu0 }
 0x2ae   : > { %v4077_v18 = vpop.f32.mrb[87].mxu0  ;;  %v2494_v8 = vadd.f32 %v4017_v44, %v5589_v57  ;;  %4413 = vmatpush1.bf16.msra.mxu0 %v4412_v16 }
 0x2af   : > { %v5614_v42 = vadd.f32 %v4075_v24, %v2486_v23  ;;  %v3011_v23 = vld [vmem:[%s5878_s5 + $0xe8] sm:$0xff]  ;;  %v3013_v24 = vld [vmem:[%s5878_s5 + $0xf8] sm:$0xff]  ;;  %v4416_v18 = vpack.c.bf16 %v3012_v29, %v3010_v28  ;;  %v3125_v29 = vld [vmem:[%s5880_s7 + $0xd0] sm:$0xff] }
 0x2b0   : > { %v4414_v27 = vpack.c.bf16 %v3013_v24, %v3011_v23  ;;  %v3108_v28 = vld [vmem:[%s5880_s7 + $0x48] sm:$0xff] }
 0x2b2   : > { %v4021_v25 = vpop.f32.mrb[76].mxu1  ;;  %4415 = vmatprep.subr.bf16.mxu0 %v4414_v27  ;;  %v3107_v27 = vld [vmem:[%s5880_s7 + $0x40] sm:$0xff] }
 0x2b3   : > { %v4022_v30 = vpop.f32.mrb[77].mxu1  ;;  %v4079_v31 = vpop.f32.mrb[88].mxu0  ;;  %4417 = vmatpush1.bf16.msra.mxu0 %v4416_v18  ;;  %v3126_v18 = vld [vmem:[%s5880_s7 + $0xd8] sm:$0xff] }
 0x2b4   : > { %v4023_v36 = vadd.f32 %v4022_v30, %v4021_v25  ;;  %v4024_v39 = vpop.f32.mrb[78].mxu1  ;;  %v4080_v11 = vpop.f32.mrb[89].mxu0  ;;  %4450 = vmatprep.subr.bf16.mxu0 %v4803_v0 }
 0x2b5   : > { %v4081_v14 = vadd.f32 %v4080_v11, %v4079_v31  ;;  %v4025_v15 = vpop.f32.mrb[79].mxu1  ;;  %v4082_v37 = vpop.f32.mrb[90].mxu0  ;;  %v4418_v31 = vpack.c.bf16 %v3116_v46, %v3115_v43  ;;  %v3117_v39 = vld [vmem:[%s5880_s7 + $0x90] sm:$0xff]  ;;  %v3118_v11 = vld [vmem:[%s5880_s7 + $0x98] sm:$0xff]  ;;  %v4436_v43 = vpack.c.bf16 %v3108_v28, %v3107_v27 }
 0x2b6   : > { %v4083_v45 = vpop.f32.mrb[91].mxu0  ;;  %v2502_v38 = vadd.f32 %v4023_v36, %v5589_v57  ;;  %v3100_v36 = vld [vmem:[%s5880_s7 + $0x8] sm:$0xff]  ;;  %v4422_v35 = vpack.c.bf16 %v3118_v11, %v3117_v39 }
 0x2b7   : > { %v5629_v47 = vadd.f32 %v4081_v14, %v2494_v8  ;;  %v4420_v37 = vpack.c.bf16 %v3100_v36, %v3099_v52  ;;  %v3102_v45 = vld [vmem:[%s5880_s7 + $0x18] sm:$0xff]  ;;  %4419 = vmatprep.subr.bf16.mxu1 %v4418_v31 }
 0x2b8   : > { %v3110_v31 = vld [vmem:[%s5880_s7 + $0x58] sm:$0xff] }
 0x2b9   : > { %4421 = vmatpush3.bf16.msra.mxu1 %v4420_v37 }
 0x2ba   : > { %v4027_v50 = vpop.f32.mrb[80].mxu1  ;;  %4423 = vmatprep.subr.bf16.mxu1 %v4422_v35 }
 0x2bb   : > { %v4028_v19 = vpop.f32.mrb[81].mxu1  ;;  %v4085_v59 = vpop.f32.mrb[92].mxu0 }
 0x2bc   : > { %v4029_v60 = vadd.f32 %v4028_v19, %v4027_v50  ;;  %v4030_v62 = vpop.f32.mrb[82].mxu1  ;;  %v4086_v1 = vpop.f32.mrb[93].mxu0 }
 0x2bd   : > { %v4087_v55 = vadd.f32 %v4086_v1, %v4085_v59  ;;  %v4031_v2 = vpop.f32.mrb[83].mxu1  ;;  %v4088_v4 = vpop.f32.mrb[94].mxu0  ;;  %v3120_v62 = vld [vmem:[%s5880_s7 + $0xa8] sm:$0xff] }
 0x2be   : > { %v4089_v56 = vpop.f32.mrb[95].mxu0  ;;  %v2510_v20 = vadd.f32 %v4029_v60, %v5589_v57  ;;  %v4426_v2 = vpack.c.bf16 %v3120_v62, %v3119_v34  ;;  %v3103_v4 = vld [vmem:[%s5880_s7 + $0x20] sm:$0xff] }
 0x2bf   : > { %v5632_v5 = vadd.f32 %v4087_v55, %v2502_v38  ;;  %v4424_v38 = vpack.c.bf16 %v3102_v45, %v3101_v40  ;;  %v3104_v56 = vld [vmem:[%s5880_s7 + $0x28] sm:$0xff] }
 0x2c1   : > { %4425 = vmatpush3.bf16.msra.mxu1 %v4424_v38 }
 0x2c2   : > { %v4033_v53 = vpop.f32.mrb[84].mxu1  ;;  %4427 = vmatprep.subr.bf16.mxu1 %v4426_v2 }
 0x2c3   : > { %v4034_v51 = vpop.f32.mrb[85].mxu1  ;;  %v4091_v7 = vpop.f32.mrb[96].mxu0 }
 0x2c4   : > { %v4035_v33 = vadd.f32 %v4034_v51, %v4033_v53  ;;  %v4036_v49 = vpop.f32.mrb[86].mxu1  ;;  %v4092_v17 = vpop.f32.mrb[97].mxu0  ;;  %v4428_v53 = vpack.c.bf16 %v3104_v56, %v3103_v4  ;;  %v4430_v51 = vpack.c.bf16 %v3122_v58, %v3121_v6 }
 0x2c5   : > { %v4093_v21 = vadd.f32 %v4092_v17, %v4091_v7  ;;  %v4037_v44 = vpop.f32.mrb[87].mxu1  ;;  %v4094_v63 = vpop.f32.mrb[98].mxu0  ;;  %v3105_v7 = vld [vmem:[%s5880_s7 + $0x30] sm:$0xff]  ;;  %v3123_v49 = vld [vmem:[%s5880_s7 + $0xc0] sm:$0xff]  ;;  %v3124_v17 = vld [vmem:[%s5880_s7 + $0xc8] sm:$0xff] }
 0x2c6   : > { %v4095_v22 = vpop.f32.mrb[99].mxu0  ;;  %v2518_v50 = vadd.f32 %v4035_v33, %v5589_v57  ;;  %4429 = vmatpush3.bf16.msra.mxu1 %v4428_v53  ;;  %v4434_v24 = vpack.c.bf16 %v3124_v17, %v3123_v49 }
 0x2c7   : > { %v5659_v26 = vadd.f32 %v4093_v21, %v2510_v20  ;;  %v4432_v22 = vpack.c.bf16 %v3106_v9, %v3105_v7  ;;  %4431 = vmatprep.subr.bf16.mxu1 %v4430_v51 }
 0x2ca   : > { %v4039_v54 = vpop.f32.mrb[88].mxu1  ;;  %4433 = vmatpush3.bf16.msra.mxu1 %v4432_v22 }
 0x2cb   : > { %v4040_v25 = vpop.f32.mrb[89].mxu1  ;;  %v4097_v30 = vpop.f32.mrb[100].mxu0  ;;  %4435 = vmatprep.subr.bf16.mxu1 %v4434_v24 }
 0x2cc   : > { %v4041_v8 = vadd.f32 %v4040_v25, %v4039_v54  ;;  %v4042_v14 = vpop.f32.mrb[90].mxu1  ;;  %v4098_v15 = vpop.f32.mrb[101].mxu0  ;;  %v4438_v25 = vpack.c.bf16 %v3126_v18, %v3125_v29 }
 0x2cd   : > { %v4099_v19 = vadd.f32 %v4098_v15, %v4097_v30  ;;  %v4043_v59 = vpop.f32.mrb[91].mxu1  ;;  %v4100_v60 = vpop.f32.mrb[102].mxu0  ;;  %v3109_v30 = vld [vmem:[%s5880_s7 + $0x50] sm:$0xff]  ;;  %v3128_v14 = vld [vmem:[%s5880_s7 + $0xe8] sm:$0xff] }
 0x2ce   : > { %v4101_v1 = vpop.f32.mrb[103].mxu0  ;;  %v2526_v16 = vadd.f32 %v4041_v8, %v5589_v57  ;;  %v3127_v8 = vld [vmem:[%s5880_s7 + $0xe0] sm:$0xff]  ;;  %4437 = vmatpush3.bf16.msra.mxu1 %v4436_v43 }
 0x2cf   : > { %v5699_v55 = vadd.f32 %v4099_v19, %v2518_v50  ;;  %v4440_v50 = vpack.c.bf16 %v3110_v31, %v3109_v30  ;;  %4439 = vmatprep.subr.bf16.mxu1 %v4438_v25  ;;  %v4442_v59 = vpack.c.bf16 %v3128_v14, %v3127_v8 }
 0x2d2   : > { %v4045_v48 = vpop.f32.mrb[92].mxu1  ;;  %4441 = vmatpush3.bf16.msra.mxu1 %v4440_v50 }
 0x2d3   : > { %v4046_v61 = vpop.f32.mrb[93].mxu1  ;;  %v4103_v3 = vpop.f32.mrb[104].mxu0  ;;  %4443 = vmatprep.subr.bf16.mxu1 %v4442_v59 }
 0x2d4   : > { %v4047_v10 = vadd.f32 %v4046_v61, %v4045_v48  ;;  %v4048_v32 = vpop.f32.mrb[94].mxu1  ;;  %v4104_v33 = vpop.f32.mrb[105].mxu0 }
 0x2d5   : > { %v4105_v20 = vadd.f32 %v4104_v33, %v4103_v3  ;;  %v4049_v21 = vpop.f32.mrb[95].mxu1  ;;  %v4106_v44 = vpop.f32.mrb[106].mxu0 }
 0x2d6   : > { %v4107_v63 = vpop.f32.mrb[107].mxu0  ;;  %v2534_v15 = vadd.f32 %v4047_v10, %v5589_v57 }
 0x2d7   : > { %v5726_v23 = vadd.f32 %v4105_v20, %v2526_v16 }
 0x2da   : > { %v4131_v54 = vpop.f32.mrb[96].mxu1 }
 0x2db   : > { %v4109_v46 = vpop.f32.mrb[108].mxu0  ;;  %v4132_v52 = vpop.f32.mrb[97].mxu1 }
 0x2dc   : > { %v4133_v36 = vadd.f32 %v4132_v52, %v4131_v54  ;;  %v4110_v39 = vpop.f32.mrb[109].mxu0  ;;  %v4134_v11 = vpop.f32.mrb[98].mxu1 }
 0x2dd   : > { %v4111_v37 = vadd.f32 %v4110_v39, %v4109_v46  ;;  %v4112_v35 = vpop.f32.mrb[110].mxu0  ;;  %v4135_v40 = vpop.f32.mrb[99].mxu1 }
 0x2de   : > { %v2672_v45 = vadd.f32 %v4133_v36, %v5599_v13  ;;  %v4113_v34 = vpop.f32.mrb[111].mxu0 }
 0x2df   : > { %v5754_v19 = vadd.f32 %v4111_v37, %v2534_v15 }
 0x2e2   : > { %v4137_v60 = vpop.f32.mrb[100].mxu1 }
 0x2e3   : > { %v4138_v62 = vpop.f32.mrb[101].mxu1  ;;  %v4195_v1 = vpop.f32.mrb[112].mxu0 }
 0x2e4   : > { %v4139_v38 = vadd.f32 %v4138_v62, %v4137_v60  ;;  %v4140_v2 = vpop.f32.mrb[102].mxu1  ;;  %v4196_v57 = vpop.f32.mrb[113].mxu0 }
 0x2e5   : > { %v4197_v4 = vadd.f32 %v4196_v57, %v4195_v1  ;;  %v4141_v56 = vpop.f32.mrb[103].mxu1  ;;  %v4198_v6 = vpop.f32.mrb[114].mxu0 }
 0x2e6   : > { %v2680_v13 = vadd.f32 %v4139_v38, %v5614_v42  ;;  %v4199_v58 = vpop.f32.mrb[115].mxu0 }
 0x2e7   : > { %v5757_v48 = vadd.f32 %v4197_v4, %v2672_v45 }
 0x2ea   : > { %v4143_v53 = vpop.f32.mrb[104].mxu1 }
 0x2eb   : > { %v4144_v61 = vpop.f32.mrb[105].mxu1  ;;  %v4201_v3 = vpop.f32.mrb[116].mxu0 }
 0x2ec   : > { %v4145_v51 = vadd.f32 %v4144_v61, %v4143_v53  ;;  %v4146_v7 = vpop.f32.mrb[106].mxu1  ;;  %v4202_v9 = vpop.f32.mrb[117].mxu0 }
 0x2ed   : > { %v4203_v10 = vadd.f32 %v4202_v9, %v4201_v3  ;;  %v4147_v32 = vpop.f32.mrb[107].mxu1  ;;  %v4204_v33 = vpop.f32.mrb[118].mxu0 }
 0x2ee   : > { %v2688_v49 = vadd.f32 %v4145_v51, %v5629_v47  ;;  %v4205_v17 = vpop.f32.mrb[119].mxu0 }
 0x2ef   : > { %v2777_v16 = vadd.f32 %v4203_v10, %v2680_v13 }
 0x2f2   : > { %v4149_v20 = vpop.f32.mrb[108].mxu1 }
 0x2f3   : > { %v4150_v21 = vpop.f32.mrb[109].mxu1  ;;  %v4207_v44 = vpop.f32.mrb[120].mxu0 }
 0x2f4   : > { %v4151_v42 = vadd.f32 %v4150_v21, %v4149_v20  ;;  %v4152_v63 = vpop.f32.mrb[110].mxu1  ;;  %v4208_v22 = vpop.f32.mrb[121].mxu0 }
 0x2f5   : > { %v4209_v24 = vadd.f32 %v4208_v22, %v4207_v44  ;;  %v4153_v27 = vpop.f32.mrb[111].mxu1  ;;  %v4210_v28 = vpop.f32.mrb[122].mxu0 }
 0x2f6   : > { %v2696_v29 = vadd.f32 %v4151_v42, %v5632_v5  ;;  %v4211_v18 = vpop.f32.mrb[123].mxu0 }
 0x2f7   : > { %v5761_v54 = vadd.f32 %v4209_v24, %v2688_v49 }
 0x2fa   : > { %v4155_v43 = vpop.f32.mrb[112].mxu1 }
 0x2fb   : > { %v4156_v46 = vpop.f32.mrb[113].mxu1  ;;  %v4213_v52 = vpop.f32.mrb[124].mxu0 }
 0x2fc   : > { %v4157_v47 = vadd.f32 %v4156_v46, %v4155_v43  ;;  %v4158_v25 = vpop.f32.mrb[114].mxu1  ;;  %v4214_v30 = vpop.f32.mrb[125].mxu0 }
 0x2fd   : > { %v4215_v31 = vadd.f32 %v4214_v30, %v4213_v52  ;;  %v4159_v36 = vpop.f32.mrb[115].mxu1  ;;  %v4216_v39 = vpop.f32.mrb[126].mxu0 }
 0x2fe   : > { %v2704_v11 = vadd.f32 %v4157_v47, %v5659_v26  ;;  %v4217_v8 = vpop.f32.mrb[127].mxu0 }
 0x2ff   : > { %v2793_v14 = vadd.f32 %v4215_v31, %v2696_v29 }
 0x302   : > { %v4161_v15 = vpop.f32.mrb[116].mxu1 }
 0x303   : > { %v4162_v37 = vpop.f32.mrb[117].mxu1  ;;  %v4219_v35 = vpop.f32.mrb[128].mxu0 }
 0x304   : > { %v4163_v5 = vadd.f32 %v4162_v37, %v4161_v15  ;;  %v4164_v40 = vpop.f32.mrb[118].mxu1  ;;  %v4220_v45 = vpop.f32.mrb[129].mxu0 }
 0x305   : > { %v4221_v34 = vadd.f32 %v4220_v45, %v4219_v35  ;;  %v4165_v50 = vpop.f32.mrb[119].mxu1  ;;  %v4222_v59 = vpop.f32.mrb[130].mxu0 }
 0x306   : > { %v2712_v60 = vadd.f32 %v4163_v5, %v5699_v55  ;;  %v4223_v62 = vpop.f32.mrb[131].mxu0 }
 0x307   : > { %v2801_v1 = vadd.f32 %v4221_v34, %v2704_v11 }
 0x30a   : > { %v4167_v38 = vpop.f32.mrb[120].mxu1 }
 0x30b   : > { %v4168_v2 = vpop.f32.mrb[121].mxu1  ;;  %v4225_v57 = vpop.f32.mrb[132].mxu0 }
 0x30c   : > { %v4169_v4 = vadd.f32 %v4168_v2, %v4167_v38  ;;  %v4170_v26 = vpop.f32.mrb[122].mxu1  ;;  %v4226_v56 = vpop.f32.mrb[133].mxu0 }
 0x30d   : > { %v4227_v6 = vadd.f32 %v4226_v56, %v4225_v57  ;;  %v4171_v13 = vpop.f32.mrb[123].mxu1  ;;  %v4228_v58 = vpop.f32.mrb[134].mxu0 }
 0x30e   : > { %v2720_v53 = vadd.f32 %v4169_v4, %v5726_v23  ;;  %v4229_v61 = vpop.f32.mrb[135].mxu0 }
 0x30f   : > { %v2809_v3 = vadd.f32 %v4227_v6, %v2712_v60 }
 0x312   : > { %v4173_v51 = vpop.f32.mrb[124].mxu1 }
 0x313   : > { %v4174_v7 = vpop.f32.mrb[125].mxu1  ;;  %v4231_v9 = vpop.f32.mrb[136].mxu0 }
 0x314   : > { %v4175_v10 = vadd.f32 %v4174_v7, %v4173_v51  ;;  %v4176_v55 = vpop.f32.mrb[126].mxu1  ;;  %v4232_v32 = vpop.f32.mrb[137].mxu0 }
 0x315   : > { %v4233_v33 = vadd.f32 %v4232_v32, %v4231_v9  ;;  %v4177_v49 = vpop.f32.mrb[127].mxu1  ;;  %v4234_v17 = vpop.f32.mrb[138].mxu0  ;;  %v3112_v55 = vld [vmem:[%s5880_s7 + $0x68] sm:$0xff] }
 0x316   : > { %v2728_v20 = vadd.f32 %v4175_v10, %v5754_v19  ;;  %v4235_v21 = vpop.f32.mrb[139].mxu0  ;;  %v3111_v10 = vld [vmem:[%s5880_s7 + $0x60] sm:$0xff]  ;;  %v3130_v49 = vld [vmem:[%s5880_s7 + $0xf8] sm:$0xff] }
 0x317   : > { %v2817_v44 = vadd.f32 %v4233_v33, %v2720_v53  ;;  %v4444_v32 = vpack.c.bf16 %v3112_v55, %v3111_v10  ;;  %v3129_v33 = vld [vmem:[%s5880_s7 + $0xf0] sm:$0xff]  ;;  %v3114_v21 = vld [vmem:[%s5880_s7 + $0x78] sm:$0xff] }
 0x318   : > { %v4446_v17 = vpack.c.bf16 %v3130_v49, %v3129_v33 }
 0x319   : > { %4445 = vmatpush3.bf16.msra.mxu1 %v4444_v32 }
 0x31a   : > { %v4353_v42 = vpop.f32.mrb[128].mxu1  ;;  %4447 = vmatprep.subr.bf16.mxu1 %v4446_v17 }
 0x31b   : > { %v2874_v63 = vadd.f32 %v4353_v42, %v2777_v16  ;;  %v4237_v22 = vpop.f32.mrb[140].mxu0  ;;  %v2865_v24 = vpop.f32.mrb[129].mxu1  ;;  %v3203_v42 = vld [vmem:[%s5882_s9] sm:$0xff] }
 0x31c   : > { %v2866_v23 = vadd.f32 %v2865_v24, %v5757_v48  ;;  %v4238_v27 = vpop.f32.mrb[141].mxu0  ;;  %v4354_v28 = vpop.f32.mrb[130].mxu1 }
 0x31d   : > { %v2930_v29 = vmax.f32 %v2874_v63, 0.0  ;;  %v4239_v18 = vadd.f32 %v4238_v27, %v4237_v22  ;;  %v2868_v43 = vpop.f32.mrb[131].mxu1  ;;  %v4240_v46 = vpop.f32.mrb[142].mxu0  ;;  %v3204_v63 = vld [vmem:[%s5882_s9 + $0x8] sm:$0xff]  ;;  %v3205_v22 = vld [vmem:[%s5882_s9 + $0x10] sm:$0xff]  ;;  %v3018_v28 = vsub.s32 0, %v4988_v12 }
 0x31e   : > { %v2928_v52 = vmax.f32 %v2866_v23, 0.0  ;;  %v4241_v47 = vpop.f32.mrb[143].mxu0  ;;  %v4451_v24 = vpack.c.bf16 %v3204_v63, %v3203_v42  ;;  %v3206_v23 = vld [vmem:[%s5882_s9 + $0x18] sm:$0xff] }
 0x31f   : > { %v2825_v25 = vadd.f32 %v4239_v18, %v2728_v20  ;;  %v3113_v20 = vld [vmem:[%s5880_s7 + $0x70] sm:$0xff]  ;;  %v4454_v27 = vpack.c.bf16 %v3206_v23, %v3205_v22  ;;  %v3022_v18 = vsub.s32 1, %v4988_v12 }
 0x320   : > { %v2961_v30 = vadd.f32 %v2930_v29, %v2928_v52  ;;  %v3014_v29 = vld [vmem:[%s5879_s6] sm:$0x3]  ;;  %v3209_v12 = vld [vmem:[%s5882_s9 + $0x30] sm:$0xff] }
 0x321   : > { %v3019_v43 = vrot.slane %v3014_v29, %v3018_v28  ;;  %v3023_v46 = vrot.slane %v3014_v29, %v3022_v18 }
 0x322   : > { %v4357_v31 = vpop.f32.mrb[132].mxu1 }
 0x323   : > { %v2890_v19 = vadd.f32 %v4357_v31, %v2793_v14  ;;  %v2881_v36 = vpop.f32.mrb[133].mxu1 }
 0x324   : > { %v2882_v39 = vadd.f32 %v2881_v36, %v5761_v54  ;;  %v4358_v16 = vpop.f32.mrb[134].mxu1  ;;  %v3207_v36 = vld [vmem:[%s5882_s9 + $0x20] sm:$0xff] }
 0x325   : > { %v2884_v11 = vpop.f32.mrb[135].mxu1  ;;  %v2934_v15 = vmax.f32 %v2890_v19, 0.0 }
 0x326   : > { %v2932_v8 = vmax.f32 %v2882_v39, 0.0  ;;  %v3208_v39 = vld [vmem:[%s5882_s9 + $0x28] sm:$0xff]  ;;  %v3210_v11 = vld [vmem:[%s5882_s9 + $0x38] sm:$0xff] }
 0x327   : > { %v4457_v16 = vpack.c.bf16 %v3208_v39, %v3207_v36 }
 0x328   : > { %v2963_v48 = vadd.f32 %v2961_v30, %v2932_v8  ;;  %v4460_v8 = vpack.c.bf16 %v3210_v11, %v3209_v12 }
 0x32a   : > { %v4361_v37 = vpop.f32.mrb[136].mxu1  ;;  %v2965_v35 = vadd.f32 %v2963_v48, %v2934_v15  ;;  %v3131_v48 = vld [vmem:[%s5881_s8] sm:$0x1] }
 0x32b   : > { %v2906_v5 = vadd.f32 %v4361_v37, %v2809_v3  ;;  %v2897_v40 = vpop.f32.mrb[137].mxu1 }
 0x32c   : > { %v2898_v45 = vadd.f32 %v2897_v40, %v2801_v1  ;;  %v4362_v34 = vpop.f32.mrb[138].mxu1  ;;  %v3211_v40 = vld [vmem:[%s5883_s10] sm:$0x1] }
 0x32d   : > { %v2900_v50 = vpop.f32.mrb[139].mxu1  ;;  %v2938_v60 = vmax.f32 %v2906_v5, 0.0 }
 0x32e   : > { %v2936_v59 = vmax.f32 %v2898_v45, 0.0 }
 0x330   : > { %v2967_v62 = vadd.f32 %v2965_v35, %v2936_v59 }
 0x332   : > { %v4365_v38 = vpop.f32.mrb[140].mxu1  ;;  %v2969_v14 = vadd.f32 %v2967_v62, %v2938_v60 }
 0x333   : > { %v2922_v2 = vadd.f32 %v4365_v38, %v2825_v25  ;;  %v2913_v57 = vpop.f32.mrb[141].mxu1 }
 0x334   : > { %v2914_v54 = vadd.f32 %v2913_v57, %v2817_v44  ;;  %v4366_v4 = vpop.f32.mrb[142].mxu1  ;;  %v4448_v44 = vpack.c.bf16 %v3114_v21, %v3113_v20 }
 0x335   : > { %v2916_v26 = vpop.f32.mrb[143].mxu1  ;;  %v2942_v6 = vmax.f32 %v2922_v2, 0.0 }
 0x336   : > { %v2940_v56 = vmax.f32 %v2914_v54, 0.0  ;;  %4449 = vmatpush3.bf16.msra.mxu1 %v4448_v44 }
 0x338   : > { %v2971_v13 = vadd.f32 %v2969_v14, %v2940_v56 }
 0x33a   : > { %v2973_v58 = vadd.f32 %v2971_v13, %v2942_v6 }
 0x33c   : > { %v2975_v53 = vrot.slane %v2973_v58, 4 }
 0x33e   : > { %v2976_v61 = vadd.f32 %v2975_v53, %v2973_v58 }
 0x340   : > { %v2977_v3 = vrot.slane %v2976_v61, 2 }
 0x342   : > { %v2978_v1 = vadd.f32 %v2977_v3, %v2976_v61 }
 0x344   : > { %v2979_v51 = vrot.slane %v2978_v1, 1 }
 0x346   : > { %v2980_v7 = vadd.f32 %v2979_v51, %v2978_v1 }
 0x348   : > { %v2981_v9 = vmul.f32 0.015625, %v2980_v7 }
 0x34a   : > { %3091 = vmatmul.mubr.f32.vlgmr.msra.gmra.mrb[144].mxu0 %v2981_v9 }
 0x34b   : > { %4452 = vmatpush3.bf16.msra.mxu0 %v4451_v24  ;;  %4383 = vmatprep.mubr.msk.f32.mxu0 %vm4805_vm6, %v4804_v41 }
 0x34c   : > { %4453 = vmatprep.subr.bf16.mxu0 %v4803_v0 }
 0x34f   : > { %4455 = vmatpush3.bf16.msra.mxu0 %v4454_v27 }
 0x350   : > { %4456 = vmatprep.subr.bf16.mxu0 %v4803_v0 }
 0x353   : > { %4458 = vmatpush3.bf16.msra.mxu0 %v4457_v16 }
 0x354   : > { %4459 = vmatprep.subr.bf16.mxu0 %v4803_v0 }
 0x357   : > { %4461 = vmatpush3.bf16.msra.mxu0 %v4460_v8 }
 0x41d   : > { %v3092_v52 = vpop.f32.mrb[144].mxu0 }
 0x41e   : > { %v3093_v47 = vadd.f32 %v3092_v52, %v3019_v43  ;;  %v3094_v25 = vpop.f32.mrb[145].mxu0 }
 0x41f   : > { %v3095_v30 = vadd.f32 %v3094_v25, %v3023_v46 }
 0x420   : > { %v3097_v19 = vmax.f32 %v3093_v47, 0.0 }
 0x421   : > { %v3098_v31 = vmax.f32 %v3095_v30, 0.0 }
 0x423   : > { %3196 = vmatprep.mubr.f32.mxu1 %v3098_v31 }
 0x424   : > { %3197 = vmatmul.mubr.f32.vlgmr.msra.gmra.mrb[144].mxu1 %v3097_v19 }
 0x4f7   : > { %v4291_v15 = vpop.f32.mrb[144].mxu1 }
 0x4f8   : > { %v4292_v0 = vpop.f32.mrb[145].mxu1 }
 0x4f9   : > { %v4293_v37 = vadd.f32 %v4292_v0, %v4291_v15 }
 0x4fb   : > { %v3199_v35 = vadd.f32 %v4293_v37, %v3131_v48 }
 0x4fd   : > { %v3202_v5 = vmax.f32 %v3199_v35, 0.0 }
 0x4ff   : > { %4384 = vmatmul.mubr.msk.f32.vlgmr.msra.gmra.mrb[146].mxu0 %vm3212_vm7, %v3202_v5 }
 0x5d2   : > { %v3282_v41 = vpop.f32.mrb[146].mxu0 }
 0x5d3   : > { %v3283_v45 = vadd.f32 %v3282_v41, %v3211_v40  ;;  %v4385_v34 = vpop.f32.mrb[147].mxu0 }
 0x5d5   : > { %3287 = vst.msk [vmem:[%s408_s14] sm:$0x1] %vm3286_vm8, %v3283_v45 }
 0x5d6   : > { %4740 = shalt.err (!%p4737_p11)
}
 0x5d7   : > { %s4741_s22 = scalar_lea.hbm %s5831_s28, 16  ;;  %s4745_s24 = scalar_lea.hbm %s5884_s11, 32 }
 0x5d8   : > { %p4742_p13 = scmp.ne.s32.totalorder %s5831_s28, %s4741_s22  ;;  %p4746_p6 = scmp.lt.u32.totalorder %s5831_s28, %s5884_s11 }
 0x5d9   : > { %p4747_p9 = scmp.lt.u32.totalorder %s4745_s24, %s4741_s22  ;;  %p4749_p10 = scmp.lt.u32.totalorder %s4741_s22, %s5831_s28 }
 0x5da   : > { %p4743_p5 = pnand %p4742_p13, %p5913_p1 }
 0x5db   : > { %p4748_p12 = por %p4747_p9, %p4746_p6 }
 0x5dc   : > { %p4744_p0 = pneg %p4743_p5 }
 0x5dd   : > { %p4750_p2 = por %p4749_p10, %p4748_p12 }
 0x5df   : > { %p4751_p3 = pnand %p4750_p2, %p4744_p0 }
 0x5e1   : > { %4754 = shalt.err (!%p4751_p3)
}
 0x5e2   : > { %4470 = dma.vmem_to_hbm [thread:$0]  (%p5913_p1), %s5833_s12, 16, %s5831_s28, %s3289_s29  }
 0x5e3 PF: > { %s5914_s14 = sld [smem:[#allocation11_spill]]  ;;  %s5915_s17 = sld [smem:[#allocation15_spill]] }
 0x5e4   : > { %p4487_p4 = scmp.ge.s32.totalorder %s4797_s20, 2 }
 0x5e9   : > { %s3313_s23 = sand.u32 1, %s5914_s14   ;;  %p5916_p7 = scmp.ne.s32.totalorder %s5915_s17, 0 }
 0x5ea   : > { %s3314_s13 = scalar_lea.sflag [#allocation4], %s3313_s23 }
 0x5eb   : > { %p4480_p8 = pnand %p4487_p4, %p5916_p7 }
 0x5ed   : > { %4780 = dma.done.wait (!%p4480_p8), %s3314_s13, 16  }
 0x5ee   : > { %4782 = vsyncadd (!%p4480_p8), %s3314_s13, 4294967280  ;;  %s5917_s20 = sld [smem:[#allocation13_spill]]  ;;  %s5918_s21 = sld [smem:[#allocation12_spill]] }
 0x5ef   : > { %s5919_s19 = sld [smem:[#allocation14_spill]]  ;;  %s5920_s17 = smov %s4789_s18 }
 0x5f4   : > { %p23_p11 = scmp.ge.s32.totalorder %s5917_s20, 4   ;;  %s5921_s18 = smov %s5918_s21 }
 0x5f6   :  { %25 = sbr.rel (!%p23_p11) target bundleno = 5 (0x5), region = 108 }
 0x5fd   :  { %3318 = vsyncpa [#allocation3], 1 }
 0x5fe   :  { %3320 = vsyncpa [#allocation3 + $0x1], 1 }
 0x5ff   :  { %3321 = vsyncpa [#allocation6], 1 }
 0x600   :  { %3322 = vsyncpa [#allocation4], 1 }
 0x601   :  { %3324 = vsyncpa [#allocation4 + $0x1], 1 }

</bundles_post_ra>
